<compile_context>
chip_gen: v5e
topology: v5e:2x2
jax: 0.10.0
libtpu: 0.0.40
codegen_flags: <defaults>
</compile_context>

<pallas_src>
import jax
import jax.numpy as jnp
from jax.experimental import pallas as pl
from jax.experimental.pallas import tpu as pltpu

B = 2            # batch
S = 8            # sequence length (sublane-aligned)
D = 128          # hidden size (lane-dense)
H = 4            # attention heads
DH = D // H      # head dim
MLP = 4 * D      # intermediate size
LAYERS = 2       # transformer layers
VOCAB = 100      # vocab size
PROJ = 128       # text projection dim (lane-dense)
EPS = 1e-5       # CLIP layer-norm epsilon
MASK_VALUE = -1e30   # scores are f32, so a large-negative f32 constant is safe

WEIGHT_NAMES = ('ln1_g', 'ln1_b', 'wq', 'bq', 'wk', 'bk', 'wv', 'bv',
                'wo', 'bo', 'ln2_g', 'ln2_b', 'w1', 'b1', 'w2', 'b2')


def _ln(x, g, b):
    """LayerNorm in f32."""
    mu = jnp.mean(x, axis=-1, keepdims=True)
    var = jnp.mean(jnp.square(x - mu), axis=-1, keepdims=True)
    return (x - mu) * jax.lax.rsqrt(var + EPS) * g + b


# ----------------------------------------------------------------------------
# Single fused Pallas kernel: LAYERS encoder layers + final LN + pool + proj
# ----------------------------------------------------------------------------
def encoder_kernel(eos_ref, x_ref,
                   ln1g_ref, ln1b_ref, wq_ref, bq_ref, wk_ref, bk_ref,
                   wv_ref, bv_ref, wo_ref, bo_ref, ln2g_ref, ln2b_ref,
                   w1_ref, b1_ref, w2_ref, b2_ref,
                   fg_ref, fb_ref, wp_ref,
                   out_ref, emb_ref):
    """Grid axis 0 = layer index.  Residual stream lives in out_ref (VMEM,
    constant block index) across grid steps; per-layer weights are streamed."""
    layer = pl.program_id(0)

    @pl.when(layer == 0)
    def _():
        out_ref[...] = x_ref[...]
        emb_ref[...] = jnp.zeros_like(emb_ref)

    x = out_ref[...]                                         # [B*S, D] f32

    # ---------------- self-attention block (pre-LN, causal) ----------------
    h = _ln(x, ln1g_ref[0], ln1b_ref[0])                     # f32
    hb = h.astype(jnp.bfloat16)                              # bf16 at MXU boundary
    # 1/sqrt(DH) is folded into wq / bq at init time.
    q = jnp.dot(hb, wq_ref[0], preferred_element_type=jnp.float32) + bq_ref[0]
    k = jnp.dot(hb, wk_ref[0], preferred_element_type=jnp.float32) + bk_ref[0]
    v = jnp.dot(hb, wv_ref[0], preferred_element_type=jnp.float32) + bv_ref[0]

    # Leading-dim-only reshapes (sublane split at tile boundary): cheap.
    q3 = q.reshape(B, S, D)
    k3 = k.reshape(B, S, D)
    v3 = v.reshape(B, S, D)

    row = jax.lax.broadcasted_iota(jnp.int32, (S, S), 0)
    col = jax.lax.broadcasted_iota(jnp.int32, (S, S), 1)
    causal = (col <= row)[None, :, :]                        # [1, S, S]

    ctx_heads = []
    for hh in range(H):
        cs = slice(hh * DH, (hh + 1) * DH)
        qh = q3[:, :, cs].astype(jnp.bfloat16)               # [B, S, DH] values
        kh = k3[:, :, cs].astype(jnp.bfloat16)
        vh = v3[:, :, cs].astype(jnp.bfloat16)
        sc = jnp.einsum('bqd,bkd->bqk', qh, kh,
                        preferred_element_type=jnp.float32)  # [B, S, S] f32
        sc = jnp.where(causal, sc, MASK_VALUE)
        sc = sc - jnp.max(sc, axis=-1, keepdims=True)
        p = jnp.exp(sc)
        p = p * pl.reciprocal(jnp.sum(p, axis=-1, keepdims=True), approx=True)
        ctx_h = jnp.einsum('bqk,bkd->bqd', p.astype(jnp.bfloat16), vh,
                           preferred_element_type=jnp.float32)
        ctx_heads.append(ctx_h.astype(jnp.bfloat16))         # [B, S, DH]
    # One lane-dense reassembly (values only, no partial stores).
    ctx = jnp.concatenate(ctx_heads, axis=-1).reshape(B * S, D)   # bf16 [B*S, D]

    attn = jnp.dot(ctx, wo_ref[0], preferred_element_type=jnp.float32) + bo_ref[0]
    x = x + attn

    # ---------------- MLP block (pre-LN, GELU) ----------------
    h2 = _ln(x, ln2g_ref[0], ln2b_ref[0])
    m = jnp.dot(h2.astype(jnp.bfloat16), w1_ref[0],
                preferred_element_type=jnp.float32) + b1_ref[0]
    # TODO(synk): HF CLIP-G uses exact (erf) GELU; tanh approximation used here.
    m = jax.nn.gelu(m, approximate=True)
    m = jnp.dot(m.astype(jnp.bfloat16), w2_ref[0],
                preferred_element_type=jnp.float32) + b2_ref[0]
    x = x + m

    out_ref[...] = x                                         # residual stays resident

    # ------------- fused epilogue: final LN + EOS pooling + projection -------------
    @pl.when(layer == pl.num_programs(0) - 1)
    def _():
        y = _ln(x, fg_ref[...], fb_ref[...])                 # [B*S, D] f32
        out_ref[...] = y                                     # last_hidden_state
        rows = [out_ref[pl.ds(bb * S + eos_ref[bb], 1), :] for bb in range(B)]
        pooled = jnp.concatenate(rows, axis=0).astype(jnp.bfloat16)   # [B, D]
        emb_ref[...] = jnp.dot(pooled, wp_ref[...],
                               preferred_element_type=jnp.float32)    # [B, PROJ]


# ----------------------------------------------------------------------------
# pallas_call wrapper
# ----------------------------------------------------------------------------
def run_encoder(x_flat, eos_pos, p):
    stacked = [p[name] for name in WEIGHT_NAMES]             # each [LAYERS, a, b]
    in_specs = [pl.BlockSpec((B * S, D), lambda l, eos: (0, 0))]
    for w in stacked:
        in_specs.append(pl.BlockSpec((1,) + w.shape[1:], lambda l, eos: (l, 0, 0)))
    in_specs += [
        pl.BlockSpec((1, D), lambda l, eos: (0, 0)),         # final_ln_g
        pl.BlockSpec((1, D), lambda l, eos: (0, 0)),         # final_ln_b
        pl.BlockSpec((D, PROJ), lambda l, eos: (0, 0)),      # text_proj
    ]
    grid_spec = pltpu.PrefetchScalarGridSpec(
        num_scalar_prefetch=1,
        grid=(LAYERS,),
        in_specs=in_specs,
        out_specs=[pl.BlockSpec((B * S, D), lambda l, eos: (0, 0)),
                   pl.BlockSpec((B, PROJ), lambda l, eos: (0, 0))],
    )
    return pl.pallas_call(
        encoder_kernel,
        out_shape=(jax.ShapeDtypeStruct((B * S, D), jnp.float32),
                   jax.ShapeDtypeStruct((B, PROJ), jnp.float32)),
        grid_spec=grid_spec,
        compiler_params=pltpu.CompilerParams(
            dimension_semantics=("arbitrary",),               # layer axis is sequential
            vmem_limit_bytes=48 * 1024 * 1024),
    )(eos_pos, x_flat, *stacked,
      p['final_ln_g'], p['final_ln_b'], p['text_proj'])


# ----------------------------------------------------------------------------
# Parameters (deterministic synthetic init) and forward
# ----------------------------------------------------------------------------
def init_params(key):
    keys = jax.random.split(key, 16)
    ki = iter(keys)

    def nrm(shape, scale=0.02):
        return (scale * jax.random.normal(next(ki), shape)).astype(jnp.float32)

    def zeros(shape):
        return jnp.zeros(shape, jnp.float32)

    scale = DH ** -0.5   # folded into wq / bq
    params = {
        'tok_emb': nrm((VOCAB, D)),
        'pos_emb': nrm((S, D)),
        # Per-layer weights stacked along a leading LAYERS axis; matmul weights
        # in bf16 (MXU native), LN params / biases in f32.
        'ln1_g': jnp.ones((LAYERS, 1, D), jnp.float32),
        'ln1_b': zeros((LAYERS, 1, D)),
        'wq': (nrm((LAYERS, D, D)) * scale).astype(jnp.bfloat16),
        'bq': zeros((LAYERS, 1, D)) * scale,
        'wk': nrm((LAYERS, D, D)).astype(jnp.bfloat16), 'bk': zeros((LAYERS, 1, D)),
        'wv': nrm((LAYERS, D, D)).astype(jnp.bfloat16), 'bv': zeros((LAYERS, 1, D)),
        'wo': nrm((LAYERS, D, D)).astype(jnp.bfloat16), 'bo': zeros((LAYERS, 1, D)),
        'ln2_g': jnp.ones((LAYERS, 1, D), jnp.float32),
        'ln2_b': zeros((LAYERS, 1, D)),
        'w1': nrm((LAYERS, D, MLP)).astype(jnp.bfloat16), 'b1': zeros((LAYERS, 1, MLP)),
        'w2': nrm((LAYERS, MLP, D)).astype(jnp.bfloat16), 'b2': zeros((LAYERS, 1, D)),
        'final_ln_g': jnp.ones((1, D), jnp.float32),
        'final_ln_b': jnp.zeros((1, D), jnp.float32),
        'text_proj': nrm((D, PROJ)).astype(jnp.bfloat16),
    }
    return params


def clip_g_forward(params, input_ids):
    """Mirrors CLIPGWrapper.forward: returns last_hidden_state and
    pooler_output (= text_embeds, the projected EOS-token hidden state)."""
    b, s = input_ids.shape
    # Embedding lookup (gather) stays in plain JAX glue.
    x = params['tok_emb'][input_ids] + params['pos_emb'][None, :s]
    x_flat = x.reshape(b * s, D).astype(jnp.float32)

    # CLIP pooling position: argmax of input_ids (EOS = max token id here).
    eos_pos = jnp.argmax(input_ids, axis=-1).astype(jnp.int32)

    hid_flat, text_embeds = run_encoder(x_flat, eos_pos, params)
    last_hidden = hid_flat.reshape(b, s, D)
    return {'last_hidden_state': last_hidden, 'pooler_output': text_embeds}


if __name__ == "__main__":
    key = jax.random.PRNGKey(0)
    pkey, dkey = jax.random.split(key)
    params = init_params(pkey)

    input_ids = jax.random.randint(dkey, (B, S), 1, VOCAB - 1, dtype=jnp.int32)
    # Place an "EOS" (largest token id) at the last position so argmax pooling
    # selects it, matching CLIP's convention.
    input_ids = input_ids.at[:, -1].set(VOCAB - 1)

    out = clip_g_forward(params, input_ids)
    jax.block_until_ready(out)

    assert out['last_hidden_state'].shape == (B, S, D)
    assert out['pooler_output'].shape == (B, PROJ)
    assert out['last_hidden_state'].dtype == jnp.float32
    assert bool(jnp.isfinite(out['last_hidden_state']).all())
    assert bool(jnp.isfinite(out['pooler_output']).all())
    print("KERNEL_OK")
</pallas_src>

<mosaic_0001>
module attributes {stable_mosaic.version = 11 : i64} {
  func.func @encoder_kernel(%arg0: i32, %arg1: memref<2xi32, #tpu.memory_space<smem>>, %arg2: memref<16x128xf32, #tpu.memory_space<vmem>>, %arg3: memref<1x1x128xf32, #tpu.memory_space<vmem>>, %arg4: memref<1x1x128xf32, #tpu.memory_space<vmem>>, %arg5: memref<1x128x128xbf16, #tpu.memory_space<vmem>>, %arg6: memref<1x1x128xf32, #tpu.memory_space<vmem>>, %arg7: memref<1x128x128xbf16, #tpu.memory_space<vmem>>, %arg8: memref<1x1x128xf32, #tpu.memory_space<vmem>>, %arg9: memref<1x128x128xbf16, #tpu.memory_space<vmem>>, %arg10: memref<1x1x128xf32, #tpu.memory_space<vmem>>, %arg11: memref<1x128x128xbf16, #tpu.memory_space<vmem>>, %arg12: memref<1x1x128xf32, #tpu.memory_space<vmem>>, %arg13: memref<1x1x128xf32, #tpu.memory_space<vmem>>, %arg14: memref<1x1x128xf32, #tpu.memory_space<vmem>>, %arg15: memref<1x128x512xbf16, #tpu.memory_space<vmem>>, %arg16: memref<1x1x512xf32, #tpu.memory_space<vmem>>, %arg17: memref<1x512x128xbf16, #tpu.memory_space<vmem>>, %arg18: memref<1x1x128xf32, #tpu.memory_space<vmem>>, %arg19: memref<1x128xf32, #tpu.memory_space<vmem>>, %arg20: memref<1x128xf32, #tpu.memory_space<vmem>>, %arg21: memref<128x128xbf16, #tpu.memory_space<vmem>>, %arg22: memref<16x128xf32, #tpu.memory_space<vmem>>, %arg23: memref<2x128xf32, #tpu.memory_space<vmem>>) attributes {dimension_semantics = [#tpu.dimension_semantics<arbitrary>], iteration_bounds = array<i64: 2>, scalar_prefetch = 1 : i64, scratch_operands = 0 : i64, tpu.core_type = #tpu.core_type<tc>, window_params = [{pipeline_mode = #tpu.pipeline_mode<synchronous>, transform_indices = @transform_0, window_bounds = array<i64: 16, 128>}, {transform_indices = @transform_1, window_bounds = array<i64: 1, 1, 128>}, {transform_indices = @transform_2, window_bounds = array<i64: 1, 1, 128>}, {transform_indices = @transform_3, window_bounds = array<i64: 1, 128, 128>}, {transform_indices = @transform_4, window_bounds = array<i64: 1, 1, 128>}, {transform_indices = @transform_5, window_bounds = array<i64: 1, 128, 128>}, {transform_indices = @transform_6, window_bounds = array<i64: 1, 1, 128>}, {transform_indices = @transform_7, window_bounds = array<i64: 1, 128, 128>}, {transform_indices = @transform_8, window_bounds = array<i64: 1, 1, 128>}, {transform_indices = @transform_9, window_bounds = array<i64: 1, 128, 128>}, {transform_indices = @transform_10, window_bounds = array<i64: 1, 1, 128>}, {transform_indices = @transform_11, window_bounds = array<i64: 1, 1, 128>}, {transform_indices = @transform_12, window_bounds = array<i64: 1, 1, 128>}, {transform_indices = @transform_13, window_bounds = array<i64: 1, 128, 512>}, {transform_indices = @transform_14, window_bounds = array<i64: 1, 1, 512>}, {transform_indices = @transform_15, window_bounds = array<i64: 1, 512, 128>}, {transform_indices = @transform_16, window_bounds = array<i64: 1, 1, 128>}, {pipeline_mode = #tpu.pipeline_mode<synchronous>, transform_indices = @transform_17, window_bounds = array<i64: 1, 128>}, {pipeline_mode = #tpu.pipeline_mode<synchronous>, transform_indices = @transform_18, window_bounds = array<i64: 1, 128>}, {pipeline_mode = #tpu.pipeline_mode<synchronous>, transform_indices = @transform_19, window_bounds = array<i64: 128, 128>}, {pipeline_mode = #tpu.pipeline_mode<synchronous>, transform_indices = @transform_20, window_bounds = array<i64: 16, 128>}, {pipeline_mode = #tpu.pipeline_mode<synchronous>, transform_indices = @transform_21, window_bounds = array<i64: 2, 128>}]} {
    %c0_i32 = arith.constant 0 : i32
    %0 = arith.cmpi eq, %arg0, %c0_i32 : i32
    %1 = arith.extui %0 : i1 to i32
    %c0_i32_0 = arith.constant 0 : i32
    %2 = arith.cmpi ne, %1, %c0_i32_0 : i32
    scf.if %2 {
      %c0_92 = arith.constant 0 : index
      %c0_93 = arith.constant 0 : index
      %225 = vector.load %arg2[%c0_92, %c0_93] : memref<16x128xf32, #tpu.memory_space<vmem>>, vector<16x128xf32>
      %c0_94 = arith.constant 0 : index
      %c0_95 = arith.constant 0 : index
      %226 = vector.load %arg22[%c0_94, %c0_95] : memref<16x128xf32, #tpu.memory_space<vmem>>, vector<16x128xf32>
      tpu.vector_store %arg22[%c0_94, %c0_95], %225 {strides = array<i32>} : memref<16x128xf32, #tpu.memory_space<vmem>>, vector<16x128xf32>,
      %cst_96 = arith.constant 0.000000e+00 : f32
      %227 = vector.broadcast %cst_96 : f32 to vector<2x128xf32>
      %c0_97 = arith.constant 0 : index
      %c0_98 = arith.constant 0 : index
      %228 = vector.load %arg23[%c0_97, %c0_98] : memref<2x128xf32, #tpu.memory_space<vmem>>, vector<2x128xf32>
      tpu.vector_store %arg23[%c0_97, %c0_98], %227 {strides = array<i32>} : memref<2x128xf32, #tpu.memory_space<vmem>>, vector<2x128xf32>,
    } else {
    }
    %c0 = arith.constant 0 : index
    %c0_1 = arith.constant 0 : index
    %3 = vector.load %arg22[%c0, %c0_1] : memref<16x128xf32, #tpu.memory_space<vmem>>, vector<16x128xf32>
    %c0_2 = arith.constant 0 : index
    %c0_3 = arith.constant 0 : index
    %c0_4 = arith.constant 0 : index
    %4 = vector.load %arg3[%c0_2, %c0_3, %c0_4] : memref<1x1x128xf32, #tpu.memory_space<vmem>>, vector<1x1x128xf32>
    %5 = vector.shape_cast %4 : vector<1x1x128xf32> to vector<1x128xf32>
    %c0_5 = arith.constant 0 : index
    %c0_6 = arith.constant 0 : index
    %c0_7 = arith.constant 0 : index
    %6 = vector.load %arg4[%c0_5, %c0_6, %c0_7] : memref<1x1x128xf32, #tpu.memory_space<vmem>>, vector<1x1x128xf32>
    %7 = vector.shape_cast %6 : vector<1x1x128xf32> to vector<1x128xf32>
    %cst = arith.constant dense<0.000000e+00> : vector<16xf32>
    %8 = vector.multi_reduction <add>, %3, %cst [1] : vector<16x128xf32> to vector<16xf32>
    %9 = vector.shape_cast %8 : vector<16xf32> to vector<16x1xf32>
    %cst_8 = arith.constant 1.280000e+02 : f32
    %10 = vector.broadcast %cst_8 : f32 to vector<16x1xf32>
    %11 = arith.divf %9, %10 : vector<16x1xf32>
    %12 = vector.broadcast %11 : vector<16x1xf32> to vector<16x128xf32>
    %13 = arith.subf %3, %12 : vector<16x128xf32>
    %14 = arith.mulf %13, %13 : vector<16x128xf32>
    %cst_9 = arith.constant dense<0.000000e+00> : vector<16xf32>
    %15 = vector.multi_reduction <add>, %14, %cst_9 [1] : vector<16x128xf32> to vector<16xf32>
    %16 = vector.shape_cast %15 : vector<16xf32> to vector<16x1xf32>
    %cst_10 = arith.constant 1.280000e+02 : f32
    %17 = vector.broadcast %cst_10 : f32 to vector<16x1xf32>
    %18 = arith.divf %16, %17 : vector<16x1xf32>
    %19 = vector.broadcast %11 : vector<16x1xf32> to vector<16x128xf32>
    %20 = arith.subf %3, %19 : vector<16x128xf32>
    %cst_11 = arith.constant 9.99999974E-6 : f32
    %21 = vector.broadcast %cst_11 : f32 to vector<16x1xf32>
    %22 = arith.addf %18, %21 : vector<16x1xf32>
    %23 = math.rsqrt %22 : vector<16x1xf32>
    %24 = vector.broadcast %23 : vector<16x1xf32> to vector<16x128xf32>
    %25 = arith.mulf %20, %24 : vector<16x128xf32>
    %26 = vector.broadcast %5 : vector<1x128xf32> to vector<16x128xf32>
    %27 = arith.mulf %25, %26 : vector<16x128xf32>
    %28 = vector.broadcast %7 : vector<1x128xf32> to vector<16x128xf32>
    %29 = arith.addf %27, %28 : vector<16x128xf32>
    %30 = arith.truncf %29 : vector<16x128xf32> to vector<16x128xbf16>
    %c0_12 = arith.constant 0 : index
    %c0_13 = arith.constant 0 : index
    %c0_14 = arith.constant 0 : index
    %31 = vector.load %arg5[%c0_12, %c0_13, %c0_14] : memref<1x128x128xbf16, #tpu.memory_space<vmem>>, vector<1x128x128xbf16>
    %32 = vector.shape_cast %31 : vector<1x128x128xbf16> to vector<128x128xbf16>
    %cst_15 = arith.constant dense<0.000000e+00> : vector<16x128xf32>
    %33 = tpu.matmul %30, %32, %cst_15 {dimension_numbers = #tpu.dot_dimension_numbers<[1], [0], [0], [1], [0, 0, 1, 1], [], []>} : vector<16x128xbf16>, vector<128x128xbf16>, vector<16x128xf32> -> vector<16x128xf32>
    %c0_16 = arith.constant 0 : index
    %c0_17 = arith.constant 0 : index
    %c0_18 = arith.constant 0 : index
    %34 = vector.load %arg6[%c0_16, %c0_17, %c0_18] : memref<1x1x128xf32, #tpu.memory_space<vmem>>, vector<1x1x128xf32>
    %35 = vector.shape_cast %34 : vector<1x1x128xf32> to vector<1x128xf32>
    %36 = vector.broadcast %35 : vector<1x128xf32> to vector<16x128xf32>
    %37 = arith.addf %33, %36 : vector<16x128xf32>
    %c0_19 = arith.constant 0 : index
    %c0_20 = arith.constant 0 : index
    %c0_21 = arith.constant 0 : index
    %38 = vector.load %arg7[%c0_19, %c0_20, %c0_21] : memref<1x128x128xbf16, #tpu.memory_space<vmem>>, vector<1x128x128xbf16>
    %39 = vector.shape_cast %38 : vector<1x128x128xbf16> to vector<128x128xbf16>
    %cst_22 = arith.constant dense<0.000000e+00> : vector<16x128xf32>
    %40 = tpu.matmul %30, %39, %cst_22 {dimension_numbers = #tpu.dot_dimension_numbers<[1], [0], [0], [1], [0, 0, 1, 1], [], []>} : vector<16x128xbf16>, vector<128x128xbf16>, vector<16x128xf32> -> vector<16x128xf32>
    %c0_23 = arith.constant 0 : index
    %c0_24 = arith.constant 0 : index
    %c0_25 = arith.constant 0 : index
    %41 = vector.load %arg8[%c0_23, %c0_24, %c0_25] : memref<1x1x128xf32, #tpu.memory_space<vmem>>, vector<1x1x128xf32>
    %42 = vector.shape_cast %41 : vector<1x1x128xf32> to vector<1x128xf32>
    %43 = vector.broadcast %42 : vector<1x128xf32> to vector<16x128xf32>
    %44 = arith.addf %40, %43 : vector<16x128xf32>
    %c0_26 = arith.constant 0 : index
    %c0_27 = arith.constant 0 : index
    %c0_28 = arith.constant 0 : index
    %45 = vector.load %arg9[%c0_26, %c0_27, %c0_28] : memref<1x128x128xbf16, #tpu.memory_space<vmem>>, vector<1x128x128xbf16>
    %46 = vector.shape_cast %45 : vector<1x128x128xbf16> to vector<128x128xbf16>
    %cst_29 = arith.constant dense<0.000000e+00> : vector<16x128xf32>
    %47 = tpu.matmul %30, %46, %cst_29 {dimension_numbers = #tpu.dot_dimension_numbers<[1], [0], [0], [1], [0, 0, 1, 1], [], []>} : vector<16x128xbf16>, vector<128x128xbf16>, vector<16x128xf32> -> vector<16x128xf32>
    %c0_30 = arith.constant 0 : index
    %c0_31 = arith.constant 0 : index
    %c0_32 = arith.constant 0 : index
    %48 = vector.load %arg10[%c0_30, %c0_31, %c0_32] : memref<1x1x128xf32, #tpu.memory_space<vmem>>, vector<1x1x128xf32>
    %49 = vector.shape_cast %48 : vector<1x1x128xf32> to vector<1x128xf32>
    %50 = vector.broadcast %49 : vector<1x128xf32> to vector<16x128xf32>
    %51 = arith.addf %47, %50 : vector<16x128xf32>
    %52 = vector.shape_cast %37 : vector<16x128xf32> to vector<2x8x128xf32>
    %53 = vector.shape_cast %44 : vector<16x128xf32> to vector<2x8x128xf32>
    %54 = vector.shape_cast %51 : vector<16x128xf32> to vector<2x8x128xf32>
    %55 = tpu.iota {dimensions = array<i32: 0>} : vector<8x8xi32>
    %56 = tpu.iota {dimensions = array<i32: 1>} : vector<8x8xi32>
    %57 = arith.cmpi sle, %56, %55 : vector<8x8xi32>
    %58 = vector.shape_cast %57 : vector<8x8xi1> to vector<1x8x8xi1>
    %59 = vector.extract_strided_slice %52 {offsets = [0, 0, 0], sizes = [2, 8, 32], strides = [1, 1, 1]} : vector<2x8x128xf32> to vector<2x8x32xf32>
    %60 = arith.truncf %59 : vector<2x8x32xf32> to vector<2x8x32xbf16>
    %61 = vector.extract_strided_slice %53 {offsets = [0, 0, 0], sizes = [2, 8, 32], strides = [1, 1, 1]} : vector<2x8x128xf32> to vector<2x8x32xf32>
    %62 = arith.truncf %61 : vector<2x8x32xf32> to vector<2x8x32xbf16>
    %63 = vector.extract_strided_slice %54 {offsets = [0, 0, 0], sizes = [2, 8, 32], strides = [1, 1, 1]} : vector<2x8x128xf32> to vector<2x8x32xf32>
    %64 = arith.truncf %63 : vector<2x8x32xf32> to vector<2x8x32xbf16>
    "tpu.trace_start"() <{level = 10 : i32, message = "bqd,bkd->bqk"}> : () -> ()
    %cst_33 = arith.constant dense<0.000000e+00> : vector<2x8x8xf32>
    %65 = tpu.matmul %60, %62, %cst_33 {dimension_numbers = #tpu.dot_dimension_numbers<[2], [2], [1], [1], [0, 0, 0, 1, 1, 1], [0], [0]>} : vector<2x8x32xbf16>, vector<2x8x32xbf16>, vector<2x8x8xf32> -> vector<2x8x8xf32>
    %cst_34 = arith.constant -1.000000e+30 : f32
    "tpu.trace_stop"() : () -> ()
    %66 = vector.shape_cast %58 : vector<1x8x8xi1> to vector<1x8x8xi1>
    %67 = vector.broadcast %66 : vector<1x8x8xi1> to vector<2x8x8xi1>
    %68 = vector.broadcast %cst_34 : f32 to vector<2x8x8xf32>
    %69 = arith.select %67, %65, %68 : vector<2x8x8xi1>, vector<2x8x8xf32>
    %cst_35 = arith.constant dense<0xFF800000> : vector<2x8xf32>
    %70 = vector.multi_reduction <maximumf>, %69, %cst_35 [2] : vector<2x8x8xf32> to vector<2x8xf32>
    %71 = vector.shape_cast %70 : vector<2x8xf32> to vector<2x8x1xf32>
    %72 = vector.broadcast %71 : vector<2x8x1xf32> to vector<2x8x8xf32>
    %73 = arith.subf %69, %72 : vector<2x8x8xf32>
    %74 = math.exp %73 : vector<2x8x8xf32>
    %cst_36 = arith.constant dense<0.000000e+00> : vector<2x8xf32>
    %75 = vector.multi_reduction <add>, %74, %cst_36 [2] : vector<2x8x8xf32> to vector<2x8xf32>
    %76 = vector.shape_cast %75 : vector<2x8xf32> to vector<2x8x1xf32>
    %77 = tpu.reciprocal %76 {approx = true} : vector<2x8x1xf32> -> vector<2x8x1xf32>
    %78 = vector.broadcast %77 : vector<2x8x1xf32> to vector<2x8x8xf32>
    %79 = arith.mulf %74, %78 : vector<2x8x8xf32>
    %80 = arith.truncf %79 : vector<2x8x8xf32> to vector<2x8x8xbf16>
    "tpu.trace_start"() <{level = 10 : i32, message = "bqk,bkd->bqd"}> : () -> ()
    %cst_37 = arith.constant dense<0.000000e+00> : vector<2x8x32xf32>
    %81 = tpu.matmul %80, %64, %cst_37 {dimension_numbers = #tpu.dot_dimension_numbers<[2], [1], [1], [2], [0, 0, 0, 1, 1, 2], [0], [0]>} : vector<2x8x8xbf16>, vector<2x8x32xbf16>, vector<2x8x32xf32> -> vector<2x8x32xf32>
    "tpu.trace_stop"() : () -> ()
    %82 = arith.truncf %81 : vector<2x8x32xf32> to vector<2x8x32xbf16>
    %83 = vector.extract_strided_slice %52 {offsets = [0, 0, 32], sizes = [2, 8, 32], strides = [1, 1, 1]} : vector<2x8x128xf32> to vector<2x8x32xf32>
    %84 = arith.truncf %83 : vector<2x8x32xf32> to vector<2x8x32xbf16>
    %85 = vector.extract_strided_slice %53 {offsets = [0, 0, 32], sizes = [2, 8, 32], strides = [1, 1, 1]} : vector<2x8x128xf32> to vector<2x8x32xf32>
    %86 = arith.truncf %85 : vector<2x8x32xf32> to vector<2x8x32xbf16>
    %87 = vector.extract_strided_slice %54 {offsets = [0, 0, 32], sizes = [2, 8, 32], strides = [1, 1, 1]} : vector<2x8x128xf32> to vector<2x8x32xf32>
    %88 = arith.truncf %87 : vector<2x8x32xf32> to vector<2x8x32xbf16>
    "tpu.trace_start"() <{level = 10 : i32, message = "bqd,bkd->bqk"}> : () -> ()
    %cst_38 = arith.constant dense<0.000000e+00> : vector<2x8x8xf32>
    %89 = tpu.matmul %84, %86, %cst_38 {dimension_numbers = #tpu.dot_dimension_numbers<[2], [2], [1], [1], [0, 0, 0, 1, 1, 1], [0], [0]>} : vector<2x8x32xbf16>, vector<2x8x32xbf16>, vector<2x8x8xf32> -> vector<2x8x8xf32>
    %cst_39 = arith.constant -1.000000e+30 : f32
    "tpu.trace_stop"() : () -> ()
    %90 = vector.shape_cast %58 : vector<1x8x8xi1> to vector<1x8x8xi1>
    %91 = vector.broadcast %90 : vector<1x8x8xi1> to vector<2x8x8xi1>
    %92 = vector.broadcast %cst_39 : f32 to vector<2x8x8xf32>
    %93 = arith.select %91, %89, %92 : vector<2x8x8xi1>, vector<2x8x8xf32>
    %cst_40 = arith.constant dense<0xFF800000> : vector<2x8xf32>
    %94 = vector.multi_reduction <maximumf>, %93, %cst_40 [2] : vector<2x8x8xf32> to vector<2x8xf32>
    %95 = vector.shape_cast %94 : vector<2x8xf32> to vector<2x8x1xf32>
    %96 = vector.broadcast %95 : vector<2x8x1xf32> to vector<2x8x8xf32>
    %97 = arith.subf %93, %96 : vector<2x8x8xf32>
    %98 = math.exp %97 : vector<2x8x8xf32>
    %cst_41 = arith.constant dense<0.000000e+00> : vector<2x8xf32>
    %99 = vector.multi_reduction <add>, %98, %cst_41 [2] : vector<2x8x8xf32> to vector<2x8xf32>
    %100 = vector.shape_cast %99 : vector<2x8xf32> to vector<2x8x1xf32>
    %101 = tpu.reciprocal %100 {approx = true} : vector<2x8x1xf32> -> vector<2x8x1xf32>
    %102 = vector.broadcast %101 : vector<2x8x1xf32> to vector<2x8x8xf32>
    %103 = arith.mulf %98, %102 : vector<2x8x8xf32>
    %104 = arith.truncf %103 : vector<2x8x8xf32> to vector<2x8x8xbf16>
    "tpu.trace_start"() <{level = 10 : i32, message = "bqk,bkd->bqd"}> : () -> ()
    %cst_42 = arith.constant dense<0.000000e+00> : vector<2x8x32xf32>
    %105 = tpu.matmul %104, %88, %cst_42 {dimension_numbers = #tpu.dot_dimension_numbers<[2], [1], [1], [2], [0, 0, 0, 1, 1, 2], [0], [0]>} : vector<2x8x8xbf16>, vector<2x8x32xbf16>, vector<2x8x32xf32> -> vector<2x8x32xf32>
    "tpu.trace_stop"() : () -> ()
    %106 = arith.truncf %105 : vector<2x8x32xf32> to vector<2x8x32xbf16>
    %107 = vector.extract_strided_slice %52 {offsets = [0, 0, 64], sizes = [2, 8, 32], strides = [1, 1, 1]} : vector<2x8x128xf32> to vector<2x8x32xf32>
    %108 = arith.truncf %107 : vector<2x8x32xf32> to vector<2x8x32xbf16>
    %109 = vector.extract_strided_slice %53 {offsets = [0, 0, 64], sizes = [2, 8, 32], strides = [1, 1, 1]} : vector<2x8x128xf32> to vector<2x8x32xf32>
    %110 = arith.truncf %109 : vector<2x8x32xf32> to vector<2x8x32xbf16>
    %111 = vector.extract_strided_slice %54 {offsets = [0, 0, 64], sizes = [2, 8, 32], strides = [1, 1, 1]} : vector<2x8x128xf32> to vector<2x8x32xf32>
    %112 = arith.truncf %111 : vector<2x8x32xf32> to vector<2x8x32xbf16>
    "tpu.trace_start"() <{level = 10 : i32, message = "bqd,bkd->bqk"}> : () -> ()
    %cst_43 = arith.constant dense<0.000000e+00> : vector<2x8x8xf32>
    %113 = tpu.matmul %108, %110, %cst_43 {dimension_numbers = #tpu.dot_dimension_numbers<[2], [2], [1], [1], [0, 0, 0, 1, 1, 1], [0], [0]>} : vector<2x8x32xbf16>, vector<2x8x32xbf16>, vector<2x8x8xf32> -> vector<2x8x8xf32>
    %cst_44 = arith.constant -1.000000e+30 : f32
    "tpu.trace_stop"() : () -> ()
    %114 = vector.shape_cast %58 : vector<1x8x8xi1> to vector<1x8x8xi1>
    %115 = vector.broadcast %114 : vector<1x8x8xi1> to vector<2x8x8xi1>
    %116 = vector.broadcast %cst_44 : f32 to vector<2x8x8xf32>
    %117 = arith.select %115, %113, %116 : vector<2x8x8xi1>, vector<2x8x8xf32>
    %cst_45 = arith.constant dense<0xFF800000> : vector<2x8xf32>
    %118 = vector.multi_reduction <maximumf>, %117, %cst_45 [2] : vector<2x8x8xf32> to vector<2x8xf32>
    %119 = vector.shape_cast %118 : vector<2x8xf32> to vector<2x8x1xf32>
    %120 = vector.broadcast %119 : vector<2x8x1xf32> to vector<2x8x8xf32>
    %121 = arith.subf %117, %120 : vector<2x8x8xf32>
    %122 = math.exp %121 : vector<2x8x8xf32>
    %cst_46 = arith.constant dense<0.000000e+00> : vector<2x8xf32>
    %123 = vector.multi_reduction <add>, %122, %cst_46 [2] : vector<2x8x8xf32> to vector<2x8xf32>
    %124 = vector.shape_cast %123 : vector<2x8xf32> to vector<2x8x1xf32>
    %125 = tpu.reciprocal %124 {approx = true} : vector<2x8x1xf32> -> vector<2x8x1xf32>
    %126 = vector.broadcast %125 : vector<2x8x1xf32> to vector<2x8x8xf32>
    %127 = arith.mulf %122, %126 : vector<2x8x8xf32>
    %128 = arith.truncf %127 : vector<2x8x8xf32> to vector<2x8x8xbf16>
    "tpu.trace_start"() <{level = 10 : i32, message = "bqk,bkd->bqd"}> : () -> ()
    %cst_47 = arith.constant dense<0.000000e+00> : vector<2x8x32xf32>
    %129 = tpu.matmul %128, %112, %cst_47 {dimension_numbers = #tpu.dot_dimension_numbers<[2], [1], [1], [2], [0, 0, 0, 1, 1, 2], [0], [0]>} : vector<2x8x8xbf16>, vector<2x8x32xbf16>, vector<2x8x32xf32> -> vector<2x8x32xf32>
    "tpu.trace_stop"() : () -> ()
    %130 = arith.truncf %129 : vector<2x8x32xf32> to vector<2x8x32xbf16>
    %131 = vector.extract_strided_slice %52 {offsets = [0, 0, 96], sizes = [2, 8, 32], strides = [1, 1, 1]} : vector<2x8x128xf32> to vector<2x8x32xf32>
    %132 = arith.truncf %131 : vector<2x8x32xf32> to vector<2x8x32xbf16>
    %133 = vector.extract_strided_slice %53 {offsets = [0, 0, 96], sizes = [2, 8, 32], strides = [1, 1, 1]} : vector<2x8x128xf32> to vector<2x8x32xf32>
    %134 = arith.truncf %133 : vector<2x8x32xf32> to vector<2x8x32xbf16>
    %135 = vector.extract_strided_slice %54 {offsets = [0, 0, 96], sizes = [2, 8, 32], strides = [1, 1, 1]} : vector<2x8x128xf32> to vector<2x8x32xf32>
    %136 = arith.truncf %135 : vector<2x8x32xf32> to vector<2x8x32xbf16>
    "tpu.trace_start"() <{level = 10 : i32, message = "bqd,bkd->bqk"}> : () -> ()
    %cst_48 = arith.constant dense<0.000000e+00> : vector<2x8x8xf32>
    %137 = tpu.matmul %132, %134, %cst_48 {dimension_numbers = #tpu.dot_dimension_numbers<[2], [2], [1], [1], [0, 0, 0, 1, 1, 1], [0], [0]>} : vector<2x8x32xbf16>, vector<2x8x32xbf16>, vector<2x8x8xf32> -> vector<2x8x8xf32>
    %cst_49 = arith.constant -1.000000e+30 : f32
    "tpu.trace_stop"() : () -> ()
    %138 = vector.shape_cast %58 : vector<1x8x8xi1> to vector<1x8x8xi1>
    %139 = vector.broadcast %138 : vector<1x8x8xi1> to vector<2x8x8xi1>
    %140 = vector.broadcast %cst_49 : f32 to vector<2x8x8xf32>
    %141 = arith.select %139, %137, %140 : vector<2x8x8xi1>, vector<2x8x8xf32>
    %cst_50 = arith.constant dense<0xFF800000> : vector<2x8xf32>
    %142 = vector.multi_reduction <maximumf>, %141, %cst_50 [2] : vector<2x8x8xf32> to vector<2x8xf32>
    %143 = vector.shape_cast %142 : vector<2x8xf32> to vector<2x8x1xf32>
    %144 = vector.broadcast %143 : vector<2x8x1xf32> to vector<2x8x8xf32>
    %145 = arith.subf %141, %144 : vector<2x8x8xf32>
    %146 = math.exp %145 : vector<2x8x8xf32>
    %cst_51 = arith.constant dense<0.000000e+00> : vector<2x8xf32>
    %147 = vector.multi_reduction <add>, %146, %cst_51 [2] : vector<2x8x8xf32> to vector<2x8xf32>
    %148 = vector.shape_cast %147 : vector<2x8xf32> to vector<2x8x1xf32>
    %149 = tpu.reciprocal %148 {approx = true} : vector<2x8x1xf32> -> vector<2x8x1xf32>
    %150 = vector.broadcast %149 : vector<2x8x1xf32> to vector<2x8x8xf32>
    %151 = arith.mulf %146, %150 : vector<2x8x8xf32>
    %152 = arith.truncf %151 : vector<2x8x8xf32> to vector<2x8x8xbf16>
    "tpu.trace_start"() <{level = 10 : i32, message = "bqk,bkd->bqd"}> : () -> ()
    %cst_52 = arith.constant dense<0.000000e+00> : vector<2x8x32xf32>
    %153 = tpu.matmul %152, %136, %cst_52 {dimension_numbers = #tpu.dot_dimension_numbers<[2], [1], [1], [2], [0, 0, 0, 1, 1, 2], [0], [0]>} : vector<2x8x8xbf16>, vector<2x8x32xbf16>, vector<2x8x32xf32> -> vector<2x8x32xf32>
    "tpu.trace_stop"() : () -> ()
    %154 = arith.truncf %153 : vector<2x8x32xf32> to vector<2x8x32xbf16>
    %155 = tpu.concatenate %82, %106, %130, %154 in 2 : vector<2x8x32xbf16>, vector<2x8x32xbf16>, vector<2x8x32xbf16>, vector<2x8x32xbf16> -> vector<2x8x128xbf16>
    %156 = vector.shape_cast %155 : vector<2x8x128xbf16> to vector<16x128xbf16>
    %c0_53 = arith.constant 0 : index
    %c0_54 = arith.constant 0 : index
    %c0_55 = arith.constant 0 : index
    %157 = vector.load %arg11[%c0_53, %c0_54, %c0_55] : memref<1x128x128xbf16, #tpu.memory_space<vmem>>, vector<1x128x128xbf16>
    %158 = vector.shape_cast %157 : vector<1x128x128xbf16> to vector<128x128xbf16>
    %cst_56 = arith.constant dense<0.000000e+00> : vector<16x128xf32>
    %159 = tpu.matmul %156, %158, %cst_56 {dimension_numbers = #tpu.dot_dimension_numbers<[1], [0], [0], [1], [0, 0, 1, 1], [], []>} : vector<16x128xbf16>, vector<128x128xbf16>, vector<16x128xf32> -> vector<16x128xf32>
    %c0_57 = arith.constant 0 : index
    %c0_58 = arith.constant 0 : index
    %c0_59 = arith.constant 0 : index
    %160 = vector.load %arg12[%c0_57, %c0_58, %c0_59] : memref<1x1x128xf32, #tpu.memory_space<vmem>>, vector<1x1x128xf32>
    %161 = vector.shape_cast %160 : vector<1x1x128xf32> to vector<1x128xf32>
    %162 = vector.broadcast %161 : vector<1x128xf32> to vector<16x128xf32>
    %163 = arith.addf %159, %162 : vector<16x128xf32>
    %164 = arith.addf %3, %163 : vector<16x128xf32>
    %c0_60 = arith.constant 0 : index
    %c0_61 = arith.constant 0 : index
    %c0_62 = arith.constant 0 : index
    %165 = vector.load %arg13[%c0_60, %c0_61, %c0_62] : memref<1x1x128xf32, #tpu.memory_space<vmem>>, vector<1x1x128xf32>
    %166 = vector.shape_cast %165 : vector<1x1x128xf32> to vector<1x128xf32>
    %c0_63 = arith.constant 0 : index
    %c0_64 = arith.constant 0 : index
    %c0_65 = arith.constant 0 : index
    %167 = vector.load %arg14[%c0_63, %c0_64, %c0_65] : memref<1x1x128xf32, #tpu.memory_space<vmem>>, vector<1x1x128xf32>
    %168 = vector.shape_cast %167 : vector<1x1x128xf32> to vector<1x128xf32>
    %cst_66 = arith.constant dense<0.000000e+00> : vector<16xf32>
    %169 = vector.multi_reduction <add>, %164, %cst_66 [1] : vector<16x128xf32> to vector<16xf32>
    %170 = vector.shape_cast %169 : vector<16xf32> to vector<16x1xf32>
    %cst_67 = arith.constant 1.280000e+02 : f32
    %171 = vector.broadcast %cst_67 : f32 to vector<16x1xf32>
    %172 = arith.divf %170, %171 : vector<16x1xf32>
    %173 = vector.broadcast %172 : vector<16x1xf32> to vector<16x128xf32>
    %174 = arith.subf %164, %173 : vector<16x128xf32>
    %175 = arith.mulf %174, %174 : vector<16x128xf32>
    %cst_68 = arith.constant dense<0.000000e+00> : vector<16xf32>
    %176 = vector.multi_reduction <add>, %175, %cst_68 [1] : vector<16x128xf32> to vector<16xf32>
    %177 = vector.shape_cast %176 : vector<16xf32> to vector<16x1xf32>
    %cst_69 = arith.constant 1.280000e+02 : f32
    %178 = vector.broadcast %cst_69 : f32 to vector<16x1xf32>
    %179 = arith.divf %177, %178 : vector<16x1xf32>
    %180 = vector.broadcast %172 : vector<16x1xf32> to vector<16x128xf32>
    %181 = arith.subf %164, %180 : vector<16x128xf32>
    %cst_70 = arith.constant 9.99999974E-6 : f32
    %182 = vector.broadcast %cst_70 : f32 to vector<16x1xf32>
    %183 = arith.addf %179, %182 : vector<16x1xf32>
    %184 = math.rsqrt %183 : vector<16x1xf32>
    %185 = vector.broadcast %184 : vector<16x1xf32> to vector<16x128xf32>
    %186 = arith.mulf %181, %185 : vector<16x128xf32>
    %187 = vector.broadcast %166 : vector<1x128xf32> to vector<16x128xf32>
    %188 = arith.mulf %186, %187 : vector<16x128xf32>
    %189 = vector.broadcast %168 : vector<1x128xf32> to vector<16x128xf32>
    %190 = arith.addf %188, %189 : vector<16x128xf32>
    %191 = arith.truncf %190 : vector<16x128xf32> to vector<16x128xbf16>
    %c0_71 = arith.constant 0 : index
    %c0_72 = arith.constant 0 : index
    %c0_73 = arith.constant 0 : index
    %192 = vector.load %arg15[%c0_71, %c0_72, %c0_73] : memref<1x128x512xbf16, #tpu.memory_space<vmem>>, vector<1x128x512xbf16>
    %193 = vector.shape_cast %192 : vector<1x128x512xbf16> to vector<128x512xbf16>
    %cst_74 = arith.constant dense<0.000000e+00> : vector<16x512xf32>
    %194 = tpu.matmul %191, %193, %cst_74 {dimension_numbers = #tpu.dot_dimension_numbers<[1], [0], [0], [1], [0, 0, 1, 1], [], []>} : vector<16x128xbf16>, vector<128x512xbf16>, vector<16x512xf32> -> vector<16x512xf32>
    %c0_75 = arith.constant 0 : index
    %c0_76 = arith.constant 0 : index
    %c0_77 = arith.constant 0 : index
    %195 = vector.load %arg16[%c0_75, %c0_76, %c0_77] : memref<1x1x512xf32, #tpu.memory_space<vmem>>, vector<1x1x512xf32>
    %196 = vector.shape_cast %195 : vector<1x1x512xf32> to vector<1x512xf32>
    %197 = vector.broadcast %196 : vector<1x512xf32> to vector<16x512xf32>
    %198 = arith.addf %194, %197 : vector<16x512xf32>
    %199 = arith.mulf %198, %198 : vector<16x512xf32>
    %200 = arith.mulf %198, %199 : vector<16x512xf32>
    %cst_78 = arith.constant 4.471500e-02 : f32
    %201 = vector.broadcast %cst_78 : f32 to vector<16x512xf32>
    %202 = arith.mulf %201, %200 : vector<16x512xf32>
    %203 = arith.addf %198, %202 : vector<16x512xf32>
    %cst_79 = arith.constant 0.797884583 : f32
    %204 = vector.broadcast %cst_79 : f32 to vector<16x512xf32>
    %205 = arith.mulf %204, %203 : vector<16x512xf32>
    %206 = math.tanh %205 : vector<16x512xf32>
    %cst_80 = arith.constant 1.000000e+00 : f32
    %207 = vector.broadcast %cst_80 : f32 to vector<16x512xf32>
    %208 = arith.addf %207, %206 : vector<16x512xf32>
    %cst_81 = arith.constant 5.000000e-01 : f32
    %209 = vector.broadcast %cst_81 : f32 to vector<16x512xf32>
    %210 = arith.mulf %209, %208 : vector<16x512xf32>
    %211 = arith.mulf %198, %210 : vector<16x512xf32>
    %212 = arith.truncf %211 : vector<16x512xf32> to vector<16x512xbf16>
    %c0_82 = arith.constant 0 : index
    %c0_83 = arith.constant 0 : index
    %c0_84 = arith.constant 0 : index
    %213 = vector.load %arg17[%c0_82, %c0_83, %c0_84] : memref<1x512x128xbf16, #tpu.memory_space<vmem>>, vector<1x512x128xbf16>
    %214 = vector.shape_cast %213 : vector<1x512x128xbf16> to vector<512x128xbf16>
    %cst_85 = arith.constant dense<0.000000e+00> : vector<16x128xf32>
    %215 = tpu.matmul %212, %214, %cst_85 {dimension_numbers = #tpu.dot_dimension_numbers<[1], [0], [0], [1], [0, 0, 1, 1], [], []>} : vector<16x512xbf16>, vector<512x128xbf16>, vector<16x128xf32> -> vector<16x128xf32>
    %c0_86 = arith.constant 0 : index
    %c0_87 = arith.constant 0 : index
    %c0_88 = arith.constant 0 : index
    %216 = vector.load %arg18[%c0_86, %c0_87, %c0_88] : memref<1x1x128xf32, #tpu.memory_space<vmem>>, vector<1x1x128xf32>
    %217 = vector.shape_cast %216 : vector<1x1x128xf32> to vector<1x128xf32>
    %218 = vector.broadcast %217 : vector<1x128xf32> to vector<16x128xf32>
    %219 = arith.addf %215, %218 : vector<16x128xf32>
    %220 = arith.addf %164, %219 : vector<16x128xf32>
    %c0_89 = arith.constant 0 : index
    %c0_90 = arith.constant 0 : index
    %221 = vector.load %arg22[%c0_89, %c0_90] : memref<16x128xf32, #tpu.memory_space<vmem>>, vector<16x128xf32>
    tpu.vector_store %arg22[%c0_89, %c0_90], %220 {strides = array<i32>} : memref<16x128xf32, #tpu.memory_space<vmem>>, vector<16x128xf32>,
    %c1_i32 = arith.constant 1 : i32
    %222 = arith.cmpi eq, %arg0, %c1_i32 : i32
    %223 = arith.extui %222 : i1 to i32
    %c0_i32_91 = arith.constant 0 : i32
    %224 = arith.cmpi ne, %223, %c0_i32_91 : i32
    scf.if %224 {
      %c0_92 = arith.constant 0 : index
      %c0_93 = arith.constant 0 : index
      %225 = vector.load %arg19[%c0_92, %c0_93] : memref<1x128xf32, #tpu.memory_space<vmem>>, vector<1x128xf32>
      %c0_94 = arith.constant 0 : index
      %c0_95 = arith.constant 0 : index
      %226 = vector.load %arg20[%c0_94, %c0_95] : memref<1x128xf32, #tpu.memory_space<vmem>>, vector<1x128xf32>
      %cst_96 = arith.constant dense<0.000000e+00> : vector<16xf32>
      %227 = vector.multi_reduction <add>, %220, %cst_96 [1] : vector<16x128xf32> to vector<16xf32>
      %228 = vector.shape_cast %227 : vector<16xf32> to vector<16x1xf32>
      %cst_97 = arith.constant 1.280000e+02 : f32
      %229 = vector.broadcast %cst_97 : f32 to vector<16x1xf32>
      %230 = arith.divf %228, %229 : vector<16x1xf32>
      %231 = vector.broadcast %230 : vector<16x1xf32> to vector<16x128xf32>
      %232 = arith.subf %220, %231 : vector<16x128xf32>
      %233 = arith.mulf %232, %232 : vector<16x128xf32>
      %cst_98 = arith.constant dense<0.000000e+00> : vector<16xf32>
      %234 = vector.multi_reduction <add>, %233, %cst_98 [1] : vector<16x128xf32> to vector<16xf32>
      %235 = vector.shape_cast %234 : vector<16xf32> to vector<16x1xf32>
      %cst_99 = arith.constant 1.280000e+02 : f32
      %236 = vector.broadcast %cst_99 : f32 to vector<16x1xf32>
      %237 = arith.divf %235, %236 : vector<16x1xf32>
      %238 = vector.broadcast %230 : vector<16x1xf32> to vector<16x128xf32>
      %239 = arith.subf %220, %238 : vector<16x128xf32>
      %cst_100 = arith.constant 9.99999974E-6 : f32
      %240 = vector.broadcast %cst_100 : f32 to vector<16x1xf32>
      %241 = arith.addf %237, %240 : vector<16x1xf32>
      %242 = math.rsqrt %241 : vector<16x1xf32>
      %243 = vector.broadcast %242 : vector<16x1xf32> to vector<16x128xf32>
      %244 = arith.mulf %239, %243 : vector<16x128xf32>
      %245 = vector.broadcast %225 : vector<1x128xf32> to vector<16x128xf32>
      %246 = arith.mulf %244, %245 : vector<16x128xf32>
      %247 = vector.broadcast %226 : vector<1x128xf32> to vector<16x128xf32>
      %248 = arith.addf %246, %247 : vector<16x128xf32>
      %c0_101 = arith.constant 0 : index
      %c0_102 = arith.constant 0 : index
      %249 = vector.load %arg22[%c0_101, %c0_102] : memref<16x128xf32, #tpu.memory_space<vmem>>, vector<16x128xf32>
      tpu.vector_store %arg22[%c0_101, %c0_102], %248 {strides = array<i32>} : memref<16x128xf32, #tpu.memory_space<vmem>>, vector<16x128xf32>,
      %c0_103 = arith.constant 0 : index
      %250 = memref.load %arg1[%c0_103] : memref<2xi32, #tpu.memory_space<smem>>
      %c0_i32_104 = arith.constant 0 : i32
      %251 = arith.addi %c0_i32_104, %250 : i32
      %252 = arith.index_cast %251 : i32 to index
      %c0_105 = arith.constant 0 : index
      %253 = vector.load %arg22[%252, %c0_105] : memref<16x128xf32, #tpu.memory_space<vmem>>, vector<1x128xf32>
      %c1 = arith.constant 1 : index
      %254 = memref.load %arg1[%c1] : memref<2xi32, #tpu.memory_space<smem>>
      %c8_i32 = arith.constant 8 : i32
      %255 = arith.addi %c8_i32, %254 : i32
      %256 = arith.index_cast %255 : i32 to index
      %c0_106 = arith.constant 0 : index
      %257 = vector.load %arg22[%256, %c0_106] : memref<16x128xf32, #tpu.memory_space<vmem>>, vector<1x128xf32>
      %258 = tpu.concatenate %253, %257 in 0 : vector<1x128xf32>, vector<1x128xf32> -> vector<2x128xf32>
      %259 = arith.truncf %258 : vector<2x128xf32> to vector<2x128xbf16>
      %c0_107 = arith.constant 0 : index
      %c0_108 = arith.constant 0 : index
      %260 = vector.load %arg21[%c0_107, %c0_108] : memref<128x128xbf16, #tpu.memory_space<vmem>>, vector<128x128xbf16>
      %cst_109 = arith.constant dense<0.000000e+00> : vector<2x128xf32>
      %261 = tpu.matmul %259, %260, %cst_109 {dimension_numbers = #tpu.dot_dimension_numbers<[1], [0], [0], [1], [0, 0, 1, 1], [], []>} : vector<2x128xbf16>, vector<128x128xbf16>, vector<2x128xf32> -> vector<2x128xf32>
      %c0_110 = arith.constant 0 : index
      %c0_111 = arith.constant 0 : index
      %262 = vector.load %arg23[%c0_110, %c0_111] : memref<2x128xf32, #tpu.memory_space<vmem>>, vector<2x128xf32>
      tpu.vector_store %arg23[%c0_110, %c0_111], %261 {strides = array<i32>} : memref<2x128xf32, #tpu.memory_space<vmem>>, vector<2x128xf32>,
    } else {
    }
    return
  }
  func.func @transform_0(%arg0: i32, %arg1: memref<2xi32, #tpu.memory_space<smem>>) -> (i32, i32) {
    %c0_i32 = arith.constant 0 : i32
    %c0_i32_0 = arith.constant 0 : i32
    %c0_i32_1 = arith.constant 0 : i32
    return %c0_i32, %c0_i32_0 : i32, i32
  }
  func.func @transform_1(%arg0: i32, %arg1: memref<2xi32, #tpu.memory_space<smem>>) -> (i32, i32, i32) {
    %c0_i32 = arith.constant 0 : i32
    %c0_i32_0 = arith.constant 0 : i32
    %c0_i32_1 = arith.constant 0 : i32
    return %arg0, %c0_i32, %c0_i32_0 : i32, i32, i32
  }
  func.func @transform_2(%arg0: i32, %arg1: memref<2xi32, #tpu.memory_space<smem>>) -> (i32, i32, i32) {
    %c0_i32 = arith.constant 0 : i32
    %c0_i32_0 = arith.constant 0 : i32
    %c0_i32_1 = arith.constant 0 : i32
    return %arg0, %c0_i32, %c0_i32_0 : i32, i32, i32
  }
  func.func @transform_3(%arg0: i32, %arg1: memref<2xi32, #tpu.memory_space<smem>>) -> (i32, i32, i32) {
    %c0_i32 = arith.constant 0 : i32
    %c0_i32_0 = arith.constant 0 : i32
    %c0_i32_1 = arith.constant 0 : i32
    return %arg0, %c0_i32, %c0_i32_0 : i32, i32, i32
  }
  func.func @transform_4(%arg0: i32, %arg1: memref<2xi32, #tpu.memory_space<smem>>) -> (i32, i32, i32) {
    %c0_i32 = arith.constant 0 : i32
    %c0_i32_0 = arith.constant 0 : i32
    %c0_i32_1 = arith.constant 0 : i32
    return %arg0, %c0_i32, %c0_i32_0 : i32, i32, i32
  }
  func.func @transform_5(%arg0: i32, %arg1: memref<2xi32, #tpu.memory_space<smem>>) -> (i32, i32, i32) {
    %c0_i32 = arith.constant 0 : i32
    %c0_i32_0 = arith.constant 0 : i32
    %c0_i32_1 = arith.constant 0 : i32
    return %arg0, %c0_i32, %c0_i32_0 : i32, i32, i32
  }
  func.func @transform_6(%arg0: i32, %arg1: memref<2xi32, #tpu.memory_space<smem>>) -> (i32, i32, i32) {
    %c0_i32 = arith.constant 0 : i32
    %c0_i32_0 = arith.constant 0 : i32
    %c0_i32_1 = arith.constant 0 : i32
    return %arg0, %c0_i32, %c0_i32_0 : i32, i32, i32
  }
  func.func @transform_7(%arg0: i32, %arg1: memref<2xi32, #tpu.memory_space<smem>>) -> (i32, i32, i32) {
    %c0_i32 = arith.constant 0 : i32
    %c0_i32_0 = arith.constant 0 : i32
    %c0_i32_1 = arith.constant 0 : i32
    return %arg0, %c0_i32, %c0_i32_0 : i32, i32, i32
  }
  func.func @transform_8(%arg0: i32, %arg1: memref<2xi32, #tpu.memory_space<smem>>) -> (i32, i32, i32) {
    %c0_i32 = arith.constant 0 : i32
    %c0_i32_0 = arith.constant 0 : i32
    %c0_i32_1 = arith.constant 0 : i32
    return %arg0, %c0_i32, %c0_i32_0 : i32, i32, i32
  }
  func.func @transform_9(%arg0: i32, %arg1: memref<2xi32, #tpu.memory_space<smem>>) -> (i32, i32, i32) {
    %c0_i32 = arith.constant 0 : i32
    %c0_i32_0 = arith.constant 0 : i32
    %c0_i32_1 = arith.constant 0 : i32
    return %arg0, %c0_i32, %c0_i32_0 : i32, i32, i32
  }
  func.func @transform_10(%arg0: i32, %arg1: memref<2xi32, #tpu.memory_space<smem>>) -> (i32, i32, i32) {
    %c0_i32 = arith.constant 0 : i32
    %c0_i32_0 = arith.constant 0 : i32
    %c0_i32_1 = arith.constant 0 : i32
    return %arg0, %c0_i32, %c0_i32_0 : i32, i32, i32
  }
  func.func @transform_11(%arg0: i32, %arg1: memref<2xi32, #tpu.memory_space<smem>>) -> (i32, i32, i32) {
    %c0_i32 = arith.constant 0 : i32
    %c0_i32_0 = arith.constant 0 : i32
    %c0_i32_1 = arith.constant 0 : i32
    return %arg0, %c0_i32, %c0_i32_0 : i32, i32, i32
  }
  func.func @transform_12(%arg0: i32, %arg1: memref<2xi32, #tpu.memory_space<smem>>) -> (i32, i32, i32) {
    %c0_i32 = arith.constant 0 : i32
    %c0_i32_0 = arith.constant 0 : i32
    %c0_i32_1 = arith.constant 0 : i32
    return %arg0, %c0_i32, %c0_i32_0 : i32, i32, i32
  }
  func.func @transform_13(%arg0: i32, %arg1: memref<2xi32, #tpu.memory_space<smem>>) -> (i32, i32, i32) {
    %c0_i32 = arith.constant 0 : i32
    %c0_i32_0 = arith.constant 0 : i32
    %c0_i32_1 = arith.constant 0 : i32
    return %arg0, %c0_i32, %c0_i32_0 : i32, i32, i32
  }
  func.func @transform_14(%arg0: i32, %arg1: memref<2xi32, #tpu.memory_space<smem>>) -> (i32, i32, i32) {
    %c0_i32 = arith.constant 0 : i32
    %c0_i32_0 = arith.constant 0 : i32
    %c0_i32_1 = arith.constant 0 : i32
    return %arg0, %c0_i32, %c0_i32_0 : i32, i32, i32
  }
  func.func @transform_15(%arg0: i32, %arg1: memref<2xi32, #tpu.memory_space<smem>>) -> (i32, i32, i32) {
    %c0_i32 = arith.constant 0 : i32
    %c0_i32_0 = arith.constant 0 : i32
    %c0_i32_1 = arith.constant 0 : i32
    return %arg0, %c0_i32, %c0_i32_0 : i32, i32, i32
  }
  func.func @transform_16(%arg0: i32, %arg1: memref<2xi32, #tpu.memory_space<smem>>) -> (i32, i32, i32) {
    %c0_i32 = arith.constant 0 : i32
    %c0_i32_0 = arith.constant 0 : i32
    %c0_i32_1 = arith.constant 0 : i32
    return %arg0, %c0_i32, %c0_i32_0 : i32, i32, i32
  }
  func.func @transform_17(%arg0: i32, %arg1: memref<2xi32, #tpu.memory_space<smem>>) -> (i32, i32) {
    %c0_i32 = arith.constant 0 : i32
    %c0_i32_0 = arith.constant 0 : i32
    %c0_i32_1 = arith.constant 0 : i32
    return %c0_i32, %c0_i32_0 : i32, i32
  }
  func.func @transform_18(%arg0: i32, %arg1: memref<2xi32, #tpu.memory_space<smem>>) -> (i32, i32) {
    %c0_i32 = arith.constant 0 : i32
    %c0_i32_0 = arith.constant 0 : i32
    %c0_i32_1 = arith.constant 0 : i32
    return %c0_i32, %c0_i32_0 : i32, i32
  }
  func.func @transform_19(%arg0: i32, %arg1: memref<2xi32, #tpu.memory_space<smem>>) -> (i32, i32) {
    %c0_i32 = arith.constant 0 : i32
    %c0_i32_0 = arith.constant 0 : i32
    %c0_i32_1 = arith.constant 0 : i32
    return %c0_i32, %c0_i32_0 : i32, i32
  }
  func.func @transform_20(%arg0: i32, %arg1: memref<2xi32, #tpu.memory_space<smem>>) -> (i32, i32) {
    %c0_i32 = arith.constant 0 : i32
    %c0_i32_0 = arith.constant 0 : i32
    %c0_i32_1 = arith.constant 0 : i32
    return %c0_i32, %c0_i32_0 : i32, i32
  }
  func.func @transform_21(%arg0: i32, %arg1: memref<2xi32, #tpu.memory_space<smem>>) -> (i32, i32) {
    %c0_i32 = arith.constant 0 : i32
    %c0_i32_0 = arith.constant 0 : i32
    %c0_i32_1 = arith.constant 0 : i32
    return %c0_i32, %c0_i32_0 : i32, i32
  }
}

</mosaic_0001>

<bundles_post_ra>
// kernel: tpu_custom_call.1
= control target key start
LH: loop header
LB: loop body
LE: loop exit
PB: predicated region body
PF: predicated region fallthrough
CT: control target
= control target key end

     0   :  { %s4625_s30 = smov [#allocation3]   ;;  %s5585_s0 = inlined_call_operand.hbm [shape: s32[2], index: 0, kind: input, shape index: {}]   ;;  %s5586_s1 = inlined_call_operand.hbm [shape: f32[16,128], index: 1, kind: input, shape index: {}]   ;;  %s5587_s2 = inlined_call_operand.hbm [shape: f32[2,1,128], index: 2, kind: input, shape index: {}]   ;;  %s5588_s3 = inlined_call_operand.vmem [shape: f32[2,1,128], index: 3, kind: input, shape index: {}]   ;;  %s5589_s4 = inlined_call_operand.hbm [shape: bf16[2,128,128], index: 4, kind: input, shape index: {}]   ;;  %s5590_s5 = inlined_call_operand.vmem [shape: f32[2,1,128], index: 5, kind: input, shape index: {}]   ;;  %s5591_s6 = inlined_call_operand.hbm [shape: bf16[2,128,128], index: 6, kind: input, shape index: {}]   ;;  %s5592_s7 = inlined_call_operand.vmem [shape: f32[2,1,128], index: 7, kind: input, shape index: {}]   ;;  %s5593_s8 = inlined_call_operand.hbm [shape: bf16[2,128,128], index: 8, kind: input, shape index: {}]   ;;  %s5594_s9 = inlined_call_operand.hbm [shape: f32[2,1,128], index: 9, kind: input, shape index: {}]   ;;  %s5595_s10 = inlined_call_operand.hbm [shape: bf16[2,128,128], index: 10, kind: input, shape index: {}]   ;;  %s5596_s11 = inlined_call_operand.hbm [shape: f32[2,1,128], index: 11, kind: input, shape index: {}]   ;;  %s5597_s12 = inlined_call_operand.hbm [shape: f32[2,1,128], index: 12, kind: input, shape index: {}]   ;;  %s5598_s13 = inlined_call_operand.hbm [shape: f32[2,1,128], index: 13, kind: input, shape index: {}]   ;;  %s5599_s14 = inlined_call_operand.hbm [shape: bf16[2,128,512], index: 14, kind: input, shape index: {}]   ;;  %s5600_s15 = inlined_call_operand.vmem [shape: f32[2,1,512], index: 15, kind: input, shape index: {}]   ;;  %s5601_s16 = inlined_call_operand.hbm [shape: bf16[2,512,128], index: 16, kind: input, shape index: {}]   ;;  %s5602_s17 = inlined_call_operand.vmem [shape: f32[2,1,128], index: 17, kind: input, shape index: {}]   ;;  %s5603_s18 = inlined_call_operand.vmem [shape: f32[1,128], index: 18, kind: input, shape index: {}]   ;;  %s5604_s19 = inlined_call_operand.vmem [shape: f32[1,128], index: 19, kind: input, shape index: {}]   ;;  %s5605_s20 = inlined_call_operand.hbm [shape: bf16[128,128], index: 20, kind: input, shape index: {}]   ;;  %s5606_s21 = inlined_call_operand.hbm [shape: f32[16,128], index: 21, kind: output, shape index: {0}]   ;;  %s5607_s22 = inlined_call_operand.hbm [shape: f32[2,128], index: 22, kind: output, shape index: {1}]  }
   0x1   :  { %5632 = sst [smem:[#allocation46_spill]] %s5585_s0 }
   0x2   :  { %5633 = sst [smem:[#allocation47_spill]] %s5586_s1 }
   0x3   :  { %5634 = sst [smem:[#allocation48_spill]] %s5587_s2 }
   0x4   :  { %5635 = sst [smem:[#allocation49_spill]] %s5588_s3 }
   0x5   :  { %5636 = sst [smem:[#allocation50_spill]] %s5589_s4 }
   0x6   :  { %5637 = sst [smem:[#allocation51_spill]] %s5590_s5 }
   0x7   :  { %5638 = sst [smem:[#allocation52_spill]] %s5591_s6 }
   0x8   :  { %5639 = sst [smem:[#allocation53_spill]] %s5592_s7 }
   0x9   :  { %5640 = sst [smem:[#allocation54_spill]] %s5593_s8 }
   0xa   :  { %5641 = sst [smem:[#allocation55_spill]] %s5594_s9 }
   0xb   :  { %5642 = sst [smem:[#allocation56_spill]] %s5595_s10 }
   0xc   :  { %5643 = sst [smem:[#allocation57_spill]] %s5596_s11 }
   0xd   :  { %5644 = sst [smem:[#allocation58_spill]] %s5597_s12 }
   0xe   :  { %5645 = sst [smem:[#allocation59_spill]] %s5598_s13 }
   0xf   :  { %5646 = sst [smem:[#allocation60_spill]] %s5600_s15 }
  0x10   :  { %5647 = sst [smem:[#allocation61_spill]] %s5601_s16 }
  0x11   :  { %5648 = sst [smem:[#allocation62_spill]] %s5602_s17 }
  0x12   :  { %5649 = sst [smem:[#allocation63_spill]] %s5603_s18 }
  0x13   :  { %5650 = sst [smem:[#allocation64_spill]] %s5604_s19 }
  0x14   :  { %5651 = sst [smem:[#allocation65_spill]] %s5605_s20 }
  0x15   :  { %5652 = sst [smem:[#allocation66_spill]] %s5606_s21 }
  0x16   :  { %5653 = sst [smem:[#allocation67_spill]] %s5607_s22 }
  0x17   :  { %s5654_s29 = sld [smem:[#allocation46_spill]] }
  0x1d   :  { %s29_s15 = sshll.u32 %s5654_s29, 4  ;;  %s30_s15 = int_to_ptr.hbm [resolvable:$true] %s29_s15 }
  0x1e   :  { %32 = dma.hbm_to_smem %s30_s15, 16, %s4625_s30, [#allocation2] }
  0x1f   :  { %4567 = dma.done.wait [#allocation2], 16 }
  0x20   :  { %4568 = vsyncadd [#allocation2], 4294967280 }
  0x21   :  { %35 = sfence }
  0x22   :  { %36 = vsyncpa [#allocation5], 0 }
  0x23   :  { %37 = vsyncpa [#allocation8], 0 }
  0x24   :  { %39 = vsyncpa [#allocation8 + $0x1], 0 }
  0x25   :  { %40 = vsyncpa [#allocation11], 0 }
  0x26   :  { %42 = vsyncpa [#allocation11 + $0x1], 0 }
  0x27   :  { %43 = vsyncpa [#allocation14], 0 }
  0x28   :  { %45 = vsyncpa [#allocation14 + $0x1], 0 }
  0x29   :  { %46 = vsyncpa [#allocation17], 0 }
  0x2a   :  { %48 = vsyncpa [#allocation17 + $0x1], 0 }
  0x2b   :  { %49 = vsyncpa [#allocation20], 0 }
  0x2c   :  { %51 = vsyncpa [#allocation20 + $0x1], 0 }
  0x2d   :  { %52 = vsyncpa [#allocation23], 0 }
  0x2e   :  { %54 = vsyncpa [#allocation23 + $0x1], 0 }
  0x2f   :  { %55 = vsyncpa [#allocation6], 0 }
  0x30   :  { %56 = vsyncpa [#allocation27], 0  ;;  %s4761_s4 = smov 0   ;;  %s4763_s15 = smov 0  }
  0x31   :  { %s4765_s0 = smov 0   ;;  %s4767_s23 = smov 0  }
  0x32 LB: > { %5655 = sst [smem:[#allocation39_spill]] %s4615_s15  ;;  %s4780_s1 = sadd.s32 4294967295, %s4623_s23   ;;  %s4623_s23 = sphi %s4767_s23, %s5712_s23   ;;  %s4619_s0 = sphi %s4765_s0, %s5715_s0   ;;  %s4615_s15 = sphi %s4763_s15, %s5714_s15   ;;  %s4611_s4 = sphi %s4761_s4, %s5713_s4  }
  0x33   : > { %5656 = sst [smem:[#allocation40_spill]] %s4619_s0  ;;  %s4783_s5 = sadd.s32 1, %s4623_s23  }
  0x34   : > { %5657 = sst [smem:[#allocation41_spill]] %s4780_s1  ;;  %s87_s24 = ssub.s32 %s4623_s23, %s4783_s5 }
  0x35   : > { %5658 = sst [smem:[#allocation42_spill]] %s4783_s5  ;;  %s90_s6 = sadd.s32 1, %s4619_s0 }
  0x36   : > { %p88_p0 = scmp.eq.s32.totalorder %s87_s24, 0  ;;  %p97_p1 = scmp.ne.s32.totalorder %s4619_s0, %s4615_s15 }
  0x37   : > { %p98_p2 = scmp.eq.s32.totalorder %s4623_s23, 0  ;;  %p103_p3 = scmp.ne.s32.totalorder %s4615_s15, %s4611_s4 }
  0x38   : > { %s4793_s25 = scalar_select %p88_p0, %s4619_s0, %s90_s6  }
  0x39   : > { %p4795_p4 = por %p98_p2, %p97_p1  ;;  %p104_p5 = scmp.eq.s32.totalorder %s4780_s1, 0 }
  0x3a   : > { %5659 = sst [smem:[#allocation43_spill]] %s4793_s25  ;;  %p3298_p6 = scmp.ge.s32.totalorder %s4623_s23, 1 }
  0x3b   : > { %p609_p7 = scmp.lt.s32.totalorder %s4623_s23, 3  ;;  %p4804_p8 = por %p104_p5, %p103_p3 }
  0x3c   : > { %p3299_p9 = scmp.ne.s32.totalorder %s4780_s1, 0  ;;  %s5665_s20 = sld [smem:[#allocation65_spill]] }
  0x3d   : > { %s5661_s2 = scalar_select %p4804_p8, 1, 0 }
  0x3e   : > { %p4809_p10 = pnand %p3298_p6, %p609_p7  ;;  %s4626_s30 = smov [#allocation24]  }
  0x3f   : > { %5662 = sst [smem:[#allocation44_spill]] %s5661_s2  ;;  %s642_s4 = sshll.u32 %s4626_s30, 4  ;;  %s643_s4 = int_to_ptr.vmem [resolvable:$true] %s642_s4 }
  0x40   : > { %s5663_s27 = scalar_select %p4809_p10, 1, 0 }
  0x41   : > { %p3920_p11 = pneg %p4809_p10  ;;  %p3963_p13 = scmp.lt.s32.totalorder %s4623_s23, 2 }
  0x42   : > { %5664 = sst [smem:[#allocation45_spill]] %s5663_s27  ;;  %s640_s29 = sshll.u32 %s5665_s20, 4  ;;  %s641_s29 = int_to_ptr.hbm [resolvable:$true] %s640_s29 }
  0x43   : > { %p4820_p12 = pnand %p3920_p11, %p104_p5  ;;  %s4826_s6 = sand.u32 1, %s4623_s23  }
  0x44   : > { %s5613_s25 = smov 64   ;;  %s5615_s3 = smov 4  }
  0x45   : > { %3926 = dma.hbm_to_vmem [thread:$0]  (!%p4820_p12), %s641_s29, 1024, %s643_s4, [#allocation23], %s5613_s25, %s5613_s25, %s5615_s3  }
  0x46   : > { %p4835_p0 = pnand %p3963_p13, %p4795_p4  ;;  %s4840_s30 = sand.u32 1, %s4619_s0  }
  0x47   : > { %s5668_s22 = sld [smem:[#allocation48_spill]]  ;;  %s659_s18 = scalar_lea.vmem [#allocation7], %s4840_s30 }
  0x48   : > { %s666_s17 = sshll.u32 %s659_s18, 4  ;;  %s5622_s7 = scalar_lea.sflag [#allocation8], %s4826_s6  ;;  %s667_s17 = int_to_ptr.vmem [resolvable:$true] %s666_s17 }
  0x49   : > { %p4850_p2 = pneg %p4835_p0 }
  0x4d   : > { %s662_s21 = scalar_lea.hbm %s5668_s22, %s4623_s23  ;;  %s4142_s18 = scalar_lea.hbm %s5668_s22, 2 }
  0x4e   : > { %s664_s19 = sshll.u32 %s662_s21, 4  ;;  %s665_s19 = int_to_ptr.hbm [resolvable:$true] %s664_s19 }
  0x4f   : > { %s4135_s29 = sshra.s32 %s665_s19, 4  ;;  %s4136_s29 = int_to_ptr.hbm [resolvable:$true] %s4135_s29 }
  0x50   : > { %s4137_s26 = scalar_lea.hbm %s4136_s29, 1  ;;  %p4143_p6 = scmp.lt.s32.totalorder %s4136_s29, %s5668_s22 }
  0x51   : > { %p4138_p1 = scmp.ne.s32.totalorder %s4136_s29, %s4137_s26  ;;  %p4144_p7 = scmp.lt.s32.totalorder %s4142_s18, %s4137_s26 }
  0x53   : > { %p4140_p3 = pnand %p4850_p2, %p4138_p1  ;;  %p4145_p11 = por %p4144_p7, %p4143_p6 }
  0x55   : > { %p4141_p4 = pneg %p4140_p3 }
  0x57   : > { %p4146_p13 = pnand %p4145_p11, %p4141_p4 }
  0x59   : > { %4149 = shalt.err (!%p4146_p13)
}
  0x5a   : > { %3930 = dma.hbm_to_vmem [thread:$0]  (!%p4835_p0), %s665_s19, 16, %s667_s17, %s5622_s7  }
  0x5b   : > { %s4867_s3 = sshll.u32 %s4840_s30, 6  ;;  %s4870_s20 = sshll.u32 %s4623_s23, 6 }
  0x5c   : > { %s5670_s26 = sld [smem:[#allocation52_spill]]  ;;  %s711_s18 = scalar_lea.vmem [#allocation10], %s4867_s3 }
  0x5d   : > { %s719_s5 = sshll.u32 %s711_s18, 4  ;;  %s5629_s0 = scalar_lea.sflag [#allocation11], %s4826_s6  ;;  %s720_s5 = int_to_ptr.vmem [resolvable:$true] %s719_s5 }
  0x62   : > { %s716_s21 = scalar_lea.hbm %s5670_s26, %s4870_s20  ;;  %s4172_s7 = scalar_lea.hbm %s5670_s26, 128 }
  0x63   : > { %s717_s22 = sshll.u32 %s716_s21, 4  ;;  %s718_s22 = int_to_ptr.hbm [resolvable:$true] %s717_s22 }
  0x64   : > { %s4165_s2 = sshra.s32 %s718_s22, 4  ;;  %s4166_s2 = int_to_ptr.hbm [resolvable:$true] %s4165_s2 }
  0x65   : > { %s4167_s15 = scalar_lea.hbm %s4166_s2, 64  ;;  %p4173_p6 = scmp.lt.s32.totalorder %s4166_s2, %s5670_s26 }
  0x66   : > { %p4168_p1 = scmp.ne.s32.totalorder %s4166_s2, %s4167_s15  ;;  %p4174_p7 = scmp.lt.s32.totalorder %s4172_s7, %s4167_s15 }
  0x68   : > { %p4170_p3 = pnand %p4168_p1, %p4850_p2  ;;  %p4175_p11 = por %p4174_p7, %p4173_p6 }
  0x6a   : > { %p4171_p4 = pneg %p4170_p3 }
  0x6c   : > { %p4176_p13 = pnand %p4175_p11, %p4171_p4 }
  0x6e   : > { %4179 = shalt.err (!%p4176_p13)
}
  0x6f   : > { %s5671_s29 = smov 4   ;;  %s5672_s21 = smov 64  }
  0x70   : > { %3936 = dma.hbm_to_vmem [thread:$0]  (!%p4835_p0), %s718_s22, 1024, %s720_s5, %s5629_s0, %s5672_s21, %s5672_s21, %s5671_s29  }
  0x71   : > { %s5673_s9 = sld [smem:[#allocation55_spill]]  ;;  %s760_s15 = scalar_lea.vmem [#allocation13], %s4840_s30 }
  0x72   : > { %s767_s2 = sshll.u32 %s760_s15, 4  ;;  %s5630_s19 = scalar_lea.sflag [#allocation14], %s4826_s6  ;;  %s768_s2 = int_to_ptr.vmem [resolvable:$true] %s767_s2 }
  0x77   : > { %s763_s1 = scalar_lea.hbm %s5673_s9, %s4623_s23  ;;  %s4202_s22 = scalar_lea.hbm %s5673_s9, 2 }
  0x78   : > { %s765_s7 = sshll.u32 %s763_s1, 4  ;;  %s766_s7 = int_to_ptr.hbm [resolvable:$true] %s765_s7 }
  0x79   : > { %s4195_s25 = sshra.s32 %s766_s7, 4  ;;  %s4196_s25 = int_to_ptr.hbm [resolvable:$true] %s4195_s25 }
  0x7a   : > { %s4197_s26 = scalar_lea.hbm %s4196_s25, 1  ;;  %p4203_p6 = scmp.lt.s32.totalorder %s4196_s25, %s5673_s9 }
  0x7b   : > { %p4198_p1 = scmp.ne.s32.totalorder %s4196_s25, %s4197_s26  ;;  %p4204_p7 = scmp.lt.s32.totalorder %s4202_s22, %s4197_s26 }
  0x7d   : > { %p4200_p3 = pnand %p4198_p1, %p4850_p2  ;;  %p4205_p11 = por %p4204_p7, %p4203_p6 }
  0x7f   : > { %p4201_p4 = pneg %p4200_p3 }
  0x81   : > { %p4206_p13 = pnand %p4205_p11, %p4201_p4 }
  0x83   : > { %4209 = shalt.err (!%p4206_p13)
}
  0x84   : > { %3942 = dma.hbm_to_vmem [thread:$0]  (!%p4835_p0), %s766_s7, 16, %s768_s2, %s5630_s19  }
  0x85   : > { %s5674_s11 = sld [smem:[#allocation57_spill]]  ;;  %s799_s1 = scalar_lea.vmem [#allocation16], %s4840_s30 }
  0x86   : > { %s806_s15 = sshll.u32 %s799_s1, 4  ;;  %s5631_s26 = scalar_lea.sflag [#allocation17], %s4826_s6  ;;  %s807_s15 = int_to_ptr.vmem [resolvable:$true] %s806_s15 }
  0x8b   : > { %s802_s27 = scalar_lea.hbm %s5674_s11, %s4623_s23  ;;  %s4232_s7 = scalar_lea.hbm %s5674_s11, 2 }
  0x8c   : > { %s804_s25 = sshll.u32 %s802_s27, 4  ;;  %s805_s25 = int_to_ptr.hbm [resolvable:$true] %s804_s25 }
  0x8d   : > { %s4225_s22 = sshra.s32 %s805_s25, 4  ;;  %s4226_s22 = int_to_ptr.hbm [resolvable:$true] %s4225_s22 }
  0x8e   : > { %s4227_s5 = scalar_lea.hbm %s4226_s22, 1  ;;  %p4233_p6 = scmp.lt.s32.totalorder %s4226_s22, %s5674_s11 }
  0x8f   : > { %p4228_p1 = scmp.ne.s32.totalorder %s4226_s22, %s4227_s5  ;;  %p4234_p7 = scmp.lt.s32.totalorder %s4232_s7, %s4227_s5 }
  0x91   : > { %p4230_p3 = pnand %p4228_p1, %p4850_p2  ;;  %p4235_p11 = por %p4234_p7, %p4233_p6 }
  0x93   : > { %p4231_p4 = pneg %p4230_p3 }
  0x95   : > { %p4236_p13 = pnand %p4235_p11, %p4231_p4 }
  0x97   : > { %4239 = shalt.err (!%p4236_p13)
}
  0x98   : > { %3948 = dma.hbm_to_vmem [thread:$0]  (!%p4835_p0), %s805_s25, 16, %s807_s15, %s5631_s26  }
  0x99   : > { %s5675_s13 = sld [smem:[#allocation59_spill]]  ;;  %s833_s18 = scalar_lea.vmem [#allocation19], %s4840_s30 }
  0x9a   : > { %s840_s22 = sshll.u32 %s833_s18, 4  ;;  %s831_s5 = scalar_lea.sflag [#allocation20], %s4826_s6  ;;  %s841_s22 = int_to_ptr.vmem [resolvable:$true] %s840_s22 }
  0x9f   : > { %s836_s27 = scalar_lea.hbm %s5675_s13, %s4623_s23  ;;  %s4262_s15 = scalar_lea.hbm %s5675_s13, 2 }
  0xa0   : > { %s838_s1 = sshll.u32 %s836_s27, 4  ;;  %s839_s1 = int_to_ptr.hbm [resolvable:$true] %s838_s1 }
  0xa1   : > { %s4255_s7 = sshra.s32 %s839_s1, 4  ;;  %s4256_s7 = int_to_ptr.hbm [resolvable:$true] %s4255_s7 }
  0xa2   : > { %s4257_s2 = scalar_lea.hbm %s4256_s7, 1  ;;  %p4263_p6 = scmp.lt.s32.totalorder %s4256_s7, %s5675_s13 }
  0xa3   : > { %p4258_p1 = scmp.ne.s32.totalorder %s4256_s7, %s4257_s2  ;;  %p4264_p7 = scmp.lt.s32.totalorder %s4262_s15, %s4257_s2 }
  0xa5   : > { %p4260_p3 = pnand %p4258_p1, %p4850_p2  ;;  %p4265_p11 = por %p4264_p7, %p4263_p6 }
  0xa7   : > { %p4261_p4 = pneg %p4260_p3 }
  0xa9   : > { %p4266_p13 = pnand %p4265_p11, %p4261_p4 }
  0xab   : > { %4269 = shalt.err (!%p4266_p13)
}
  0xac   : > { %3954 = dma.hbm_to_vmem [thread:$0]  (!%p4835_p0), %s839_s1, 16, %s841_s22, %s831_s5  }
  0xad   : > { %s5676_s19 = sld [smem:[#allocation47_spill]]  ;;  %s4629_s17 = smov [#allocation4]  }
  0xae   : > { %s622_s7 = sshll.u32 %s4629_s17, 4  ;;  %s4630_s2 = smov 128   ;;  %s623_s7 = int_to_ptr.vmem [resolvable:$true] %s622_s7 }
  0xaf   : > { %s4631_s15 = smov 8   ;;  %s5677_s26 = sld [smem:[#allocation50_spill]] }
  0xb0   : > { %s683_s11 = scalar_lea.vmem [#allocation9], %s4867_s3 }
  0xb1   : > { %s691_s13 = sshll.u32 %s683_s11, 4  ;;  %s692_s13 = int_to_ptr.vmem [resolvable:$true] %s691_s13 }
  0xb3   : > { %s620_s18 = sshll.u32 %s5676_s19, 4  ;;  %s621_s18 = int_to_ptr.hbm [resolvable:$true] %s620_s18 }
  0xb4   : > { %3923 = dma.hbm_to_vmem [thread:$0]  (!%p4820_p12), %s621_s18, 256, %s623_s7, [#allocation5], %s4630_s2, %s4630_s2, %s4631_s15  }
  0xb5   : > { %s688_s9 = scalar_lea.hbm %s5677_s26, %s4870_s20  ;;  %s4322_s24 = scalar_lea.hbm %s5677_s26, 128 }
  0xb6   : > { %s689_s1 = sshll.u32 %s688_s9, 4  ;;  %s690_s1 = int_to_ptr.hbm [resolvable:$true] %s689_s1 }
  0xb7   : > { %s4315_s22 = sshra.s32 %s690_s1, 4  ;;  %s4316_s22 = int_to_ptr.hbm [resolvable:$true] %s4315_s22 }
  0xb8   : > { %s4317_s0 = scalar_lea.hbm %s4316_s22, 64  ;;  %p4323_p12 = scmp.lt.s32.totalorder %s4316_s22, %s5677_s26 }
  0xb9   : > { %p4318_p1 = scmp.ne.s32.totalorder %s4316_s22, %s4317_s0  ;;  %p4324_p6 = scmp.lt.s32.totalorder %s4322_s24, %s4317_s0 }
  0xbb   : > { %p4320_p3 = pnand %p4318_p1, %p4850_p2  ;;  %p4325_p7 = por %p4324_p6, %p4323_p12 }
  0xbd   : > { %p4321_p4 = pneg %p4320_p3 }
  0xbf   : > { %p4326_p11 = pnand %p4325_p7, %p4321_p4 }
  0xc1   : > { %4329 = shalt.err (!%p4326_p11)
}
  0xc2   : > { %s5678_s9 = scalar_lea.sflag [#allocation8], %s4826_s6  ;;  %s5679_s8 = sld [smem:[#allocation54_spill]] }
  0xc3   : > { %3933 = dma.hbm_to_vmem [thread:$0]  (!%p4835_p0), %s690_s1, 1024, %s692_s13, %s5678_s9, %s5672_s21, %s5672_s21, %s5671_s29  }
  0xc4   : > { %s739_s15 = scalar_lea.vmem [#allocation12], %s4867_s3 }
  0xc5   : > { %s747_s25 = sshll.u32 %s739_s15, 4  ;;  %s748_s25 = int_to_ptr.vmem [resolvable:$true] %s747_s25 }
  0xc8   : > { %s744_s2 = scalar_lea.hbm %s5679_s8, %s4870_s20  ;;  %s4352_s13 = scalar_lea.hbm %s5679_s8, 128 }
  0xc9   : > { %s745_s16 = sshll.u32 %s744_s2, 4  ;;  %s746_s16 = int_to_ptr.hbm [resolvable:$true] %s745_s16 }
  0xca   : > { %s4345_s22 = sshra.s32 %s746_s16, 4  ;;  %s4346_s22 = int_to_ptr.hbm [resolvable:$true] %s4345_s22 }
  0xcb   : > { %s4347_s0 = scalar_lea.hbm %s4346_s22, 64  ;;  %p4353_p4 = scmp.lt.s32.totalorder %s4346_s22, %s5679_s8 }
  0xcc   : > { %p4348_p13 = scmp.ne.s32.totalorder %s4346_s22, %s4347_s0  ;;  %p4354_p12 = scmp.lt.s32.totalorder %s4352_s13, %s4347_s0 }
  0xce   : > { %p4350_p1 = pnand %p4348_p13, %p4850_p2  ;;  %p4355_p6 = por %p4354_p12, %p4353_p4 }
  0xd0   : > { %p4351_p3 = pneg %p4350_p1 }
  0xd2   : > { %p4356_p7 = pnand %p4355_p6, %p4351_p3 }
  0xd4   : > { %4359 = shalt.err (!%p4356_p7)
}
  0xd5   : > { %s5680_s18 = scalar_lea.sflag [#allocation11], %s4826_s6  ;;  %s5681_s10 = sld [smem:[#allocation56_spill]] }
  0xd6   : > { %3939 = dma.hbm_to_vmem [thread:$0]  (!%p4835_p0), %s746_s16, 1024, %s748_s25, %s5680_s18, %s5672_s21, %s5672_s21, %s5671_s29  }
  0xd7   : > { %s778_s7 = scalar_lea.vmem [#allocation15], %s4867_s3 }
  0xd8   : > { %s786_s2 = sshll.u32 %s778_s7, 4  ;;  %s787_s2 = int_to_ptr.vmem [resolvable:$true] %s786_s2 }
  0xdb   : > { %s783_s11 = scalar_lea.hbm %s5681_s10, %s4870_s20  ;;  %s4382_s25 = scalar_lea.hbm %s5681_s10, 128 }
  0xdc   : > { %s784_s15 = sshll.u32 %s783_s11, 4  ;;  %s785_s15 = int_to_ptr.hbm [resolvable:$true] %s784_s15 }
  0xdd   : > { %s4375_s22 = sshra.s32 %s785_s15, 4  ;;  %s4376_s22 = int_to_ptr.hbm [resolvable:$true] %s4375_s22 }
  0xde   : > { %s4377_s0 = scalar_lea.hbm %s4376_s22, 64  ;;  %p4383_p3 = scmp.lt.s32.totalorder %s4376_s22, %s5681_s10 }
  0xdf   : > { %p4378_p11 = scmp.ne.s32.totalorder %s4376_s22, %s4377_s0  ;;  %p4384_p4 = scmp.lt.s32.totalorder %s4382_s25, %s4377_s0 }
  0xe1   : > { %p4380_p13 = pnand %p4378_p11, %p4850_p2  ;;  %p4385_p12 = por %p4384_p4, %p4383_p3 }
  0xe3   : > { %p4381_p1 = pneg %p4380_p13 }
  0xe5   : > { %p4386_p6 = pnand %p4385_p12, %p4381_p1 }
  0xe7   : > { %4389 = shalt.err (!%p4386_p6)
}
  0xe8   : > { %s5682_s3 = scalar_lea.sflag [#allocation14], %s4826_s6  ;;  %s5683_s12 = sld [smem:[#allocation58_spill]] }
  0xe9   : > { %3945 = dma.hbm_to_vmem [thread:$0]  (!%p4835_p0), %s785_s15, 1024, %s787_s2, %s5682_s3, %s5672_s21, %s5672_s21, %s5671_s29  }
  0xea   : > { %s816_s18 = scalar_lea.vmem [#allocation18], %s4840_s30  ;;  %s3314_s11 = sshll.u32 %s4840_s30, 8 }
  0xeb   : > { %s823_s17 = sshll.u32 %s816_s18, 4  ;;  %s824_s17 = int_to_ptr.vmem [resolvable:$true] %s823_s17 }
  0xee   : > { %s819_s24 = scalar_lea.hbm %s5683_s12, %s4623_s23  ;;  %s4412_s2 = scalar_lea.hbm %s5683_s12, 2 }
  0xef   : > { %s821_s9 = sshll.u32 %s819_s24, 4  ;;  %s822_s9 = int_to_ptr.hbm [resolvable:$true] %s821_s9 }
  0xf0   : > { %s4405_s7 = sshra.s32 %s822_s9, 4  ;;  %s4406_s7 = int_to_ptr.hbm [resolvable:$true] %s4405_s7 }
  0xf1   : > { %s4407_s22 = scalar_lea.hbm %s4406_s7, 1  ;;  %p4413_p1 = scmp.lt.s32.totalorder %s4406_s7, %s5683_s12 }
  0xf2   : > { %p4408_p7 = scmp.ne.s32.totalorder %s4406_s7, %s4407_s22  ;;  %p4414_p3 = scmp.lt.s32.totalorder %s4412_s2, %s4407_s22 }
  0xf4   : > { %p4410_p11 = pnand %p4408_p7, %p4850_p2  ;;  %p4415_p4 = por %p4414_p3, %p4413_p1 }
  0xf6   : > { %p4411_p13 = pneg %p4410_p11 }
  0xf8   : > { %p4416_p12 = pnand %p4415_p4, %p4411_p13 }
  0xfa   : > { %4419 = shalt.err (!%p4416_p12)
}
  0xfb   : > { %s5684_s25 = scalar_lea.sflag [#allocation17], %s4826_s6  ;;  %s3776_s16 = sshll.u32 %s4623_s23, 8 }
  0xfc   : > { %3951 = dma.hbm_to_vmem [thread:$0]  (!%p4835_p0), %s822_s9, 16, %s824_s17, %s5684_s25  }
  0xfd   : > { %s856_s20 = scalar_lea.hbm %s5599_s14, %s3776_s16  ;;  %s851_s1 = scalar_lea.vmem [#allocation21], %s3314_s11 }
  0xfe   : > { %s859_s24 = sshll.u32 %s851_s1, 4  ;;  %s857_s18 = sshll.u32 %s856_s20, 4  ;;  %s860_s24 = int_to_ptr.vmem [resolvable:$true] %s859_s24  ;;  %s858_s18 = int_to_ptr.hbm [resolvable:$true] %s857_s18 }
  0xff   : > { %s4435_s7 = sshra.s32 %s858_s18, 4  ;;  %s4442_s23 = scalar_lea.hbm %s5599_s14, 512  ;;  %s4436_s7 = int_to_ptr.hbm [resolvable:$true] %s4435_s7 }
 0x100   : > { %s4437_s22 = scalar_lea.hbm %s4436_s7, 256  ;;  %p4443_p13 = scmp.lt.s32.totalorder %s4436_s7, %s5599_s14 }
 0x101   : > { %p4438_p6 = scmp.ne.s32.totalorder %s4436_s7, %s4437_s22  ;;  %p4444_p1 = scmp.lt.s32.totalorder %s4442_s23, %s4437_s22 }
 0x103   : > { %p4440_p7 = pnand %p4438_p6, %p4850_p2  ;;  %p4445_p3 = por %p4444_p1, %p4443_p13 }
 0x105   : > { %p4441_p11 = pneg %p4440_p7 }
 0x107   : > { %p4446_p4 = pnand %p4445_p3, %p4441_p11 }
 0x109   : > { %4449 = shalt.err (!%p4446_p4)
}
 0x10a   : > { %s4632_s2 = smov 256   ;;  %s4633_s15 = smov 16  }
 0x10b   : > { %3957 = dma.hbm_to_vmem [thread:$0]  (!%p4835_p0), %s858_s18, 4096, %s860_s24, %s831_s5, %s4632_s2, %s4632_s2, %s4633_s15  }
 0x10c   : > { %s5685_s13 = sld [smem:[#allocation61_spill]]  ;;  %s880_s1 = scalar_lea.vmem [#allocation22], %s3314_s11 }
 0x10d   : > { %s888_s7 = sshll.u32 %s880_s1, 4  ;;  %s877_s22 = scalar_lea.sflag [#allocation23], %s4826_s6  ;;  %s889_s7 = int_to_ptr.vmem [resolvable:$true] %s888_s7 }
 0x112   : > { %s885_s3 = scalar_lea.hbm %s5685_s13, %s3776_s16  ;;  %s4472_s24 = scalar_lea.hbm %s5685_s13, 512 }
 0x113   : > { %s886_s20 = sshll.u32 %s885_s3, 4  ;;  %s887_s20 = int_to_ptr.hbm [resolvable:$true] %s886_s20 }
 0x114   : > { %s4465_s0 = sshra.s32 %s887_s20, 4  ;;  %s4466_s0 = int_to_ptr.hbm [resolvable:$true] %s4465_s0 }
 0x115   : > { %s4467_s17 = scalar_lea.hbm %s4466_s0, 256  ;;  %p4473_p11 = scmp.lt.s32.totalorder %s4466_s0, %s5685_s13 }
 0x116   : > { %p4468_p12 = scmp.ne.s32.totalorder %s4466_s0, %s4467_s17  ;;  %p4474_p13 = scmp.lt.s32.totalorder %s4472_s24, %s4467_s17 }
 0x118   : > { %p4470_p6 = pnand %p4468_p12, %p4850_p2  ;;  %p4475_p1 = por %p4474_p13, %p4473_p11 }
 0x11a   : > { %p4471_p7 = pneg %p4470_p6 }
 0x11c   : > { %p4476_p3 = pnand %p4475_p1, %p4471_p7 }
 0x11e   : > { %4479 = shalt.err (!%p4476_p3)
}
 0x11f   : > { %3960 = dma.hbm_to_vmem [thread:$0]  (!%p4835_p0), %s887_s20, 4096, %s889_s7, %s877_s22, %s5672_s21, %s5672_s21, %s5671_s29  }
 0x120   : > { %906 = sbr.rel (%p4809_p10) target bundleno = 2714 (0xa9a), region = 100  ;;  %s5687_s30 = sld [smem:[#allocation41_spill]] (!%p4809_p10) }
 0x125   : > { %4570 = dma.done.wait (%p104_p5), [#allocation5], 256  }
 0x126   : > { %4572 = vsyncadd (%p104_p5), [#allocation5], 4294967040  ;;  %s5688_s4 = sld [smem:[#allocation39_spill]]  ;;  %s5074_s9 = sand.u32 1, %s5687_s30  }
 0x127   : > { %s914_s27 = scalar_lea.sflag [#allocation8], %s5074_s9 }
 0x12c   : > { %s5077_s28 = sand.u32 1, %s5688_s4  }
 0x12d   : > { %4574 = dma.done.wait (%p4804_p8), %s914_s27, 1040  }
 0x12e   : > { %4576 = vsyncadd (%p4804_p8), %s914_s27, 4294966256  ;;  %s3322_s21 = sshll.u32 %s5077_s28, 6  ;;  %s933_s15 = scalar_lea.sflag [#allocation11], %s5074_s9 }
 0x12f   : > { %s5086_s2 = scalar_lea.vmem [#allocation9], %s3322_s21  ;;  %s5089_s19 = scalar_lea.vmem [#allocation10], %s3322_s21 }
 0x130   : > { %4578 = dma.done.wait (%p4804_p8), %s933_s15, 2048  }
 0x131   : > { %4580 = vsyncadd (%p4804_p8), %s933_s15, 4294965248  ;;  %s5095_s25 = scalar_lea.vmem [#allocation12], %s3322_s21  ;;  %s953_s3 = scalar_lea.sflag [#allocation14], %s5074_s9 }
 0x132   : > { %4582 = dma.done.wait (%p4804_p8), %s953_s3, 1040  }
 0x133   : > { %4584 = vsyncadd (%p4804_p8), %s953_s3, 4294966256  ;;  %s5103_s1 = scalar_lea.vmem [#allocation15], %s3322_s21  ;;  %s972_s7 = scalar_lea.sflag [#allocation17], %s5074_s9 }
 0x134   : > { %4586 = dma.done.wait (%p4804_p8), %s972_s7, 32  }
 0x135   : > { %4588 = vsyncadd (%p4804_p8), %s972_s7, 4294967264  ;;  %s990_s17 = scalar_lea.sflag [#allocation20], %s5074_s9 }
 0x136   : > { %4590 = dma.done.wait (%p4804_p8), %s990_s17, 4112  }
 0x137   : > { %4592 = vsyncadd (%p4804_p8), %s990_s17, 4294963184  ;;  %s3326_s5 = sshll.u32 %s5077_s28, 8  ;;  %s1009_s18 = scalar_lea.sflag [#allocation23], %s5074_s9 }
 0x138   : > { %s5119_s24 = scalar_lea.vmem [#allocation21], %s3326_s5  ;;  %s5122_s16 = scalar_lea.vmem [#allocation22], %s3326_s5 }
 0x139   : > { %4594 = dma.done.wait (%p4804_p8), %s1009_s18, 4096  }
 0x13a   : > { %4596 = vsyncadd (%p4804_p8), %s1009_s18, 4294963200 }
 0x13b   : > { %4598 = dma.done.wait (%p104_p5), [#allocation23], 1024  }
 0x13c   : > { %4600 = vsyncadd (%p104_p5), [#allocation23], 4294966272  ;;  %p1133_p10 = scmp.lt.s32.totalorder %s5687_s30, 1  ;;  %s5690_s27 = sld [smem:[#allocation49_spill]] }
 0x13d   : > { %s5691_s3 = sld [smem:[#allocation51_spill]] }
 0x13e   : > { %s5134_s6 = scalar_select %p1133_p10, %s5687_s30, 1 }
 0x13f   : > { %s5692_s18 = sld [smem:[#allocation53_spill]] }
 0x140   : > { %s3329_s0 = sshll.u32 %s5134_s6, 2  ;;  %s5693_s29 = sld [smem:[#allocation60_spill]] }
 0x141   : > { %s5694_s10 = sld [smem:[#allocation62_spill]] }
 0x142   : > { %s1135_s11 = scalar_lea.vmem %s5690_s27, %s5134_s6 }
 0x143   : > { %s1138_s7 = scalar_lea.vmem %s5691_s3, %s5134_s6  ;;  %1153 = sbr.rel (%p3299_p9) target bundleno = 332 (0x14c), region = 156 }
 0x145   : > { %s1141_s23 = scalar_lea.vmem %s5692_s18, %s5134_s6 }
 0x146   : > { %s5152_s8 = scalar_lea.vmem %s5693_s29, %s3329_s0 }
 0x147   : > { %s1148_s12 = scalar_lea.vmem %s5694_s10, %s5134_s6 }
 0x148   : > { %v1154_v0 = vld [vmem:[#allocation4] sm:$0xff]  ;;  %v1155_v1 = vld [vmem:[#allocation4 + $0x8] sm:$0xff]  ;;  %v4634_v2 = vmov 0.0  }
 0x149   : > { %1156 = vst [vmem:[#allocation25] sm:$0xff] %v1154_v0 }
 0x14a   : > { %1157 = vst [vmem:[#allocation25 + $0x8] sm:$0xff] %v1155_v1 }
 0x14b   : > { %1158 = vst [vmem:[#allocation26] sm:$0x3] %v4634_v2 }
 0x14c PF: > { %v4635_v5 = vmov 128.0   ;;  %v3785_v20 = vld [vmem:[%s5086_s2 + $0x38] sm:$0xff]  ;;  %v3784_v23 = vld [vmem:[%s5086_s2 + $0x30] sm:$0xff]  ;;  %v3783_v26 = vld [vmem:[%s5086_s2 + $0x28] sm:$0xff]  ;;  %s5695_s10 = scalar_lea.vmem [#allocation7], %s5077_s28  ;;  %vm1478_vm7 = vcmask 261120  }
 0x14d   : > { %4029 = vrcp.f32 %v4635_v5  ;;  %v3793_v21 = vld [vmem:[%s5089_s19 + $0x38] sm:$0xff]  ;;  %1289 = vmatpush.bf16.msra.mxu0 %v3785_v20  ;;  %v3792_v24 = vld [vmem:[%s5089_s19 + $0x30] sm:$0xff]  ;;  %v3791_v27 = vld [vmem:[%s5089_s19 + $0x28] sm:$0xff]  ;;  %vm1549_vm8 = vcmask 1043456   ;;  %s4637_s21 = smov 64   ;;  %s4638_s15 = smov 32  }
 0x14e   : > { %v3801_v22 = vld [vmem:[%s5095_s25 + $0x38] sm:$0xff]  ;;  %1371 = vmatpush.bf16.msra.mxu1 %v3793_v21  ;;  %v3800_v25 = vld [vmem:[%s5095_s25 + $0x30] sm:$0xff]  ;;  %v3799_v28 = vld [vmem:[%s5095_s25 + $0x28] sm:$0xff]  ;;  %vm1521_vm10 = vcmask 64512   ;;  %vm1989_vm11 = vcmask 523264   ;;  %vm1994_vm12 = vcmask 785408  }
 0x14f   : > { %1453 = vmatpush.bf16.msra.mxu2 %v3801_v22  ;;  %v3782_v29 = vld [vmem:[%s5086_s2 + $0x20] sm:$0xff]  ;;  %v3781_v32 = vld [vmem:[%s5086_s2 + $0x18] sm:$0xff]  ;;  %v3780_v35 = vld [vmem:[%s5086_s2 + $0x10] sm:$0xff]  ;;  %s5704_s3 = scalar_lea.vmem [#allocation19], %s5077_s28 }
 0x150   : > { %v5160_v3 = vld [vmem:[#allocation25] sm:$0xff]  ;;  %v3790_v30 = vld [vmem:[%s5089_s19 + $0x20] sm:$0xff]  ;;  %v3789_v33 = vld [vmem:[%s5089_s19 + $0x18] sm:$0xff] }
 0x151   : > { %1163 = vadd.xlane.f32.xlu0 %v5160_v3  ;;  %v5163_v4 = vld [vmem:[#allocation25 + $0x8] sm:$0xff]  ;;  %1290 = vmatpush.bf16.msra.mxu0 %v3784_v23  ;;  %v3798_v31 = vld [vmem:[%s5095_s25 + $0x20] sm:$0xff]  ;;  %v3797_v34 = vld [vmem:[%s5095_s25 + $0x18] sm:$0xff] }
 0x152   : > { %1372 = vmatpush.bf16.msra.mxu1 %v3792_v24  ;;  %v3788_v36 = vld [vmem:[%s5089_s19 + $0x10] sm:$0xff]  ;;  %v3779_v38 = vld [vmem:[%s5086_s2 + $0x8] sm:$0xff]  ;;  %v3778_v42 = vld [vmem:[%s5086_s2] sm:$0xff] }
 0x153   : > { %v4030_v6 = vpop.eup %4029  ;;  %1454 = vmatpush.bf16.msra.mxu2 %v3800_v25  ;;  %v3796_v37 = vld [vmem:[%s5095_s25 + $0x10] sm:$0xff]  ;;  %v3787_v39 = vld [vmem:[%s5089_s19 + $0x8] sm:$0xff]  ;;  %v3786_v43 = vld [vmem:[%s5089_s19] sm:$0xff] }
 0x154   : > { %v1168_v7 = vmul.f32 128.0, %v4030_v6  ;;  %vm1172_vm0 = vweird.f32 %v4030_v6  ;;  %v3795_v40 = vld [vmem:[%s5095_s25 + $0x8] sm:$0xff]  ;;  %v3794_v45 = vld [vmem:[%s5095_s25] sm:$0xff]  ;;  %v4020_v63 = vld [vmem:[%s5695_s10] ss:$0 sm:$0xff] }
 0x155   : > { %1291 = vmatpush.bf16.msra.mxu0 %v3783_v26 }
 0x156   : > { %v1169_v8 = vsub.f32 1.0, %v1168_v7  ;;  %1373 = vmatpush.bf16.msra.mxu1 %v3791_v27 }
 0x157   : > { %1455 = vmatpush.bf16.msra.mxu2 %v3799_v28 }
 0x158   : > { %v1170_v9 = vmul.f32 %v4030_v6, %v1169_v8 }
 0x159   : > { %1165 = vadd.xlane.f32.xlu0 %v5163_v4  ;;  %1292 = vmatpush.bf16.msra.mxu0 %v3782_v29 }
 0x15a   : > { %v1171_v10 = vadd.f32 %v4030_v6, %v1170_v9  ;;  %1374 = vmatpush.bf16.msra.mxu1 %v3790_v30 }
 0x15b   : > { %1456 = vmatpush.bf16.msra.mxu2 %v3798_v31 }
 0x15c   : > { %v5166_v11 = vsel %vm1172_vm0, %v4030_v6, %v1171_v10  ;;  %v4021_v6 = vld [vmem:[%s1135_s11] ss:$0 sm:$0xff]  ;;  %s5699_s11 = scalar_lea.vmem [#allocation13], %s5077_s28 }
 0x15d   : > { %1293 = vmatpush.bf16.msra.mxu0 %v3781_v32 }
 0x15e   : > { %1375 = vmatpush.bf16.msra.mxu1 %v3789_v33 }
 0x15f   : > { %1457 = vmatpush.bf16.msra.mxu2 %v3797_v34 }
 0x161   : > { %1294 = vmatpush.bf16.msra.mxu0 %v3780_v35 }
 0x162   : > { %1376 = vmatpush.bf16.msra.mxu1 %v3788_v36 }
 0x163   : > { %1458 = vmatpush.bf16.msra.mxu2 %v3796_v37 }
 0x165   : > { %1295 = vmatpush.bf16.msra.mxu0 %v3779_v38 }
 0x166   : > { %1377 = vmatpush.bf16.msra.mxu1 %v3787_v39 }
 0x167   : > { %1459 = vmatpush.bf16.msra.mxu2 %v3795_v40 }
 0x169   : > { %1296 = vmatpush.bf16.msra.mxu0 %v3778_v42 }
 0x16a   : > { %1378 = vmatpush.bf16.msra.mxu1 %v3786_v43 }
 0x16b   : > { %1460 = vmatpush.bf16.msra.mxu2 %v3794_v45 }
 0x1c4   : > { %v1164_v12 = vpop.xlane.xlu0 %1163 }
 0x1c5   : > { %v1174_v13 = vmul.f32 %v5166_v11, %v1164_v12  ;;  %v4023_v12 = vld [vmem:[%s1141_s23] ss:$0 sm:$0xff]  ;;  %s4636_s23 = smov 96  }
 0x1c7   : > { %v5170_v14 = vsub.f32 %v5160_v3, %v1174_v13  ;;  %v4022_v13 = vld [vmem:[%s1138_s7] ss:$0 sm:$0xff] }
 0x1c9   : > { %v1178_v15 = vmul.f32 %v5170_v14, %v5170_v14 }
 0x1cb   : > { %1180 = vadd.xlane.f32.xlu1 %v1178_v15 }
 0x1cc   : > { %v1166_v16 = vpop.xlane.xlu0 %1165 }
 0x1cd   : > { %v1175_v17 = vmul.f32 %v5166_v11, %v1166_v16 }
 0x1cf   : > { %v5176_v18 = vsub.f32 %v5163_v4, %v1175_v17 }
 0x1d1   : > { %v1179_v19 = vmul.f32 %v5176_v18, %v5176_v18 }
 0x1d3   : > { %1182 = vadd.xlane.f32.xlu1 %v1179_v19  ;;  %v4024_v19 = vld [vmem:[%s5699_s11] ss:$0 sm:$0xff] }
 0x23e   : > { %v1181_v41 = vpop.xlane.xlu1 %1180 }
 0x23f   : > { %v1184_v44 = vmul.f32 %v1181_v41, %v5166_v11 }
 0x241   : > { %v1186_v46 = vadd.f32 1e-05, %v1184_v44 }
 0x243   : > { %4031 = vrsqrt.f32 %v1186_v46  ;;  %vm1194_vm2 = vweird.f32 %v1186_v46 }
 0x246   : > { %v1183_v47 = vpop.xlane.xlu1 %1182 }
 0x247   : > { %v1185_v48 = vmul.f32 %v1183_v47, %v5166_v11 }
 0x249   : > { %v4032_v49 = vpop.eup %4031  ;;  %v1187_v50 = vadd.f32 1e-05, %v1185_v48 }
 0x24a   : > { %v1189_v51 = vmul.f32 %v4032_v49, %v1186_v46  ;;  %vm1195_vm1 = vweird.f32 %v4032_v49 }
 0x24b   : > { %4033 = vrsqrt.f32 %v1187_v50  ;;  %vm1196_vm3 = vmor %vm1194_vm2, %vm1195_vm1  ;;  %vm1204_vm5 = vweird.f32 %v1187_v50 }
 0x24c   : > { %v1190_v52 = vmul.f32 %v4032_v49, %v1189_v51 }
 0x24e   : > { %v1191_v53 = vmul.f32 0.5, %v1190_v52 }
 0x250   : > { %v1192_v54 = vsub.f32 1.5, %v1191_v53 }
 0x251   : > { %v4034_v55 = vpop.eup %4033 }
 0x252   : > { %v1193_v56 = vmul.f32 %v4032_v49, %v1192_v54  ;;  %v1199_v57 = vmul.f32 %v4034_v55, %v1187_v50  ;;  %vm1205_vm4 = vweird.f32 %v4034_v55 }
 0x253   : > { %vm1206_vm6 = vmor %vm1204_vm5, %vm1205_vm4 }
 0x254   : > { %v1200_v58 = vmul.f32 %v4034_v55, %v1199_v57  ;;  %v1197_v59 = vsel %vm1196_vm3, %v4032_v49, %v1193_v56  ;;  %v1467_v56 = vlaneseq }
 0x255   : > { %v1208_v62 = vmul.f32 %v1197_v59, %v5170_v14 }
 0x256   : > { %v1201_v60 = vmul.f32 0.5, %v1200_v58  ;;  %v1468_v57 = vshrl.u32 %v1467_v56, 7  ;;  %v1470_v58 = vand.u32 127, %v1467_v56 }
 0x257   : > { %v1213_v5 = vmul.f32 %v4020_v63, %v1208_v62 }
 0x258   : > { %v1202_v61 = vsub.f32 1.5, %v1201_v60  ;;  %vm5260_vm9 = vcmp.le.s32.totalorder %v1470_v58, %v1468_v57 }
 0x259   : > { %v1218_v8 = vadd.f32 %v4021_v6, %v1213_v5 }
 0x25a   : > { %v1203_v0 = vmul.f32 %v4034_v55, %v1202_v61 }
 0x25c   : > { %v1207_v1 = vsel %vm1206_vm6, %v4034_v55, %v1203_v0 }
 0x25d   : > { %v1209_v2 = vmul.f32 %v1207_v1, %v5176_v18 }
 0x25f   : > { %v1214_v7 = vmul.f32 %v4020_v63, %v1209_v2 }
 0x261   : > { %v1219_v9 = vadd.f32 %v4021_v6, %v1214_v7 }
 0x263   : > { %v1220_v10 = vpack.c.bf16 %v1219_v9, %v1218_v8 }
 0x265   : > { %1297 = vmatmul.bf16.vlgmr.msra.gmra.mxu0 %v1220_v10  ;;  %1379 = vmatmul.bf16.vlgmr.msra.gmra.mxu1 %v1220_v10 }
 0x266   : > { %1461 = vmatmul.bf16.vlgmr.msra.gmra.mxu2 %v1220_v10 }
 0x2e2   : > { %v1298_v14 = vpop.f32.mrf.mxu0  ;;  %v1380_v15 = vpop.f32.mrf.mxu1 }
 0x2e3   : > { %v1381_v16 = vadd.f32 %v4023_v12, %v1380_v15  ;;  %v1299_v18 = vadd.f32 %v4022_v13, %v1298_v14 }
 0x2e5   : > { %v1474_v17 = vpack.c.bf16 %v1381_v16, %v1381_v16  ;;  %v1472_v24 = vpack.c.bf16 %v1299_v18, %v1299_v18 }
 0x2e7   : > { %v1593_v20 = vunpack.c.l.b16 %v1474_v17  ;;  %v1483_v21 = vsel %vm1478_vm7, %v1474_v17, 0  ;;  %v1588_v33 = vunpack.c.l.b16 %v1472_v24 }
 0x2e8   : > { %1492 = vmatpush.bf16.xpose.msra.mxu3 %v1483_v21 }
 0x2e9   : > { %v1594_v22 = vpack.c.b16 %v1593_v20, %v1593_v20  ;;  %v1462_v23 = vpop.f32.mrf.mxu2  ;;  %v1589_v41 = vpack.c.b16 %v1588_v33, %v1588_v33 }
 0x2ea   : > { %v1463_v25 = vadd.f32 %v4024_v19, %v1462_v23  ;;  %v1300_v26 = vpop.f32.mrf.mxu0  ;;  %v1382_v27 = vpop.f32.mrf.mxu1 }
 0x2eb   : > { %v1301_v28 = vadd.f32 %v4022_v13, %v1300_v26  ;;  %v1383_v29 = vadd.f32 %v4023_v12, %v1382_v27  ;;  %1595 = vrot.lane.b32.xlu2 %v1594_v22, %s4636_s23 }
 0x2ec   : > { %v5229_v30 = vpack.c.bf16 %v1463_v25, %v1463_v25 }
 0x2ed   : > { %v1473_v31 = vpack.c.bf16 %v1301_v28, %v1301_v28  ;;  %v1475_v32 = vpack.c.bf16 %v1383_v29, %v1383_v29 }
 0x2ee   : > { %v1551_v37 = vsel %vm1549_vm8, %v5229_v30, 0  ;;  %v1672_v21 = vunpack.c.l.b16 %v5229_v30 }
 0x2ef   : > { %v1617_v34 = vunpack.c.l.b16 %v1473_v31  ;;  %v1622_v35 = vunpack.c.l.b16 %v1475_v32  ;;  %3427 = vmatmul.msk.bf16.vlgmr.msra.gmra.mxu3 %vm1478_vm7, %v1472_v24  ;;  %v1502_v36 = vsel %vm1478_vm7, %v1475_v32, 0 }
 0x2f0   : > { %1511 = vmatpush.bf16.xpose.msrb.mxu3 %v1502_v36  ;;  %v5280_v24 = vpack.c.b16 %v1672_v21, %v1672_v21 }
 0x2f1   : > { %v1618_v38 = vpack.c.b16 %v1617_v34, %v1617_v34  ;;  %v1623_v39 = vpack.c.b16 %v1622_v35, %v1622_v35  ;;  %v1464_v40 = vpop.f32.mrf.mxu2 }
 0x2f2   : > { %v1465_v42 = vadd.f32 %v4024_v19, %v1464_v40 }
 0x2f3   : > { %1624 = vrot.lane.b32.xlu0 %v1623_v39, %s4636_s23  ;;  %1619 = vrot.lane.b32.xlu1 %v1618_v38, %s4636_s23 }
 0x2f4   : > { %v5237_v43 = vpack.c.bf16 %v1465_v42, %v1465_v42  ;;  %1590 = vrot.lane.b32.xlu2 %v1589_v41, %s4636_s23 }
 0x2f6   : > { %v1570_v44 = vsel %vm1549_vm8, %v5237_v43, 0  ;;  %v1696_v42 = vunpack.c.l.b16 %v5237_v43 }
 0x2f7   : > { %1579 = vmatpush.bf16.msrb.mxu0 %v1570_v44 }
 0x2f8   : > { %1560 = vmatpush.bf16.msra.mxu3 %v1551_v37 }
 0x2fb   : > { %1744 = vrot.lane.b32.xlu0 %v1618_v38, %s4637_s21  ;;  %1862 = vrot.lane.b32.xlu1 %v1623_v39, %s4638_s15 }
 0x2fc   : > { %1723 = vrot.lane.b32.xlu2 %v1594_v22, %s4637_s21 }
 0x2ff   : > { %3428 = vmatmul.msk.bf16.vlgmr.msrb.gmra.mxu3 %vm1478_vm7, %v1473_v31 }
 0x303   : > { %1837 = vrot.lane.b32.xlu0 %v1589_v41, %s4638_s15 }
 0x304   : > { %1746 = vrot.lane.b32.xlu2 %v1623_v39, %s4637_s21 }
 0x30c   : > { %1721 = vrot.lane.b32.xlu2 %v1589_v41, %s4637_s21 }
 0x314   : > { %1839 = vrot.lane.b32.xlu2 %v1594_v22, %s4638_s15 }
 0x31c   : > { %1860 = vrot.lane.b32.xlu2 %v1618_v38, %s4638_s15 }
 0x345   : > { %v1596_v45 = vpop.permute.xlu2 %1595 }
 0x346   : > { %v1601_v46 = vsel %vm1478_vm7, %v1596_v45, 0  ;;  %v5293_v45 = vpack.c.b16 %v1696_v42, %v1696_v42 }
 0x347   : > { %1610 = vmatpush.bf16.xpose.msrb.mxu2 %v1601_v46 }
 0x34e   : > { %v1591_v47 = vpop.permute.xlu2 %1590 }
 0x34f   : > { %3431 = vmatmul.msk.bf16.vlgmr.msrb.gmra.mxu2 %vm1478_vm7, %v1591_v47 }
 0x356   : > { %v1724_v48 = vpop.permute.xlu2 %1723 }
 0x357   : > { %v1729_v49 = vsel %vm1478_vm7, %v1724_v48, 0 }
 0x358   : > { %1738 = vmatpush.bf16.xpose.msrb.mxu1 %v1729_v49 }
 0x35e   : > { %v1747_v50 = vpop.permute.xlu2 %1746 }
 0x35f   : > { %v1752_v55 = vsel %vm1478_vm7, %v1747_v50, 0 }
 0x365   : > { %v1625_v51 = vpop.permute.xlu0 %1624  ;;  %v1620_v52 = vpop.permute.xlu1 %1619 }
 0x366   : > { %v1630_v53 = vsel %vm1478_vm7, %v1625_v51, 0  ;;  %v1722_v54 = vpop.permute.xlu2 %1721 }
 0x367   : > { %3435 = vmatmul.msk.bf16.vlgmr.msrb.gmra.mxu1 %vm1478_vm7, %v1722_v54  ;;  %1639 = vmatpush.bf16.xpose.msra.mxu2 %v1630_v53 }
 0x36d   : > { %v1745_v59 = vpop.permute.xlu0 %1744  ;;  %v1863_v60 = vpop.permute.xlu1 %1862 }
 0x36e   : > { %v1868_v61 = vsel %vm1478_vm7, %v1863_v60, 0  ;;  %v1840_v62 = vpop.permute.xlu2 %1839  ;;  %3432 = vmatmul.msk.bf16.vlgmr.msra.gmra.mxu2 %vm1478_vm7, %v1620_v52 }
 0x36f   : > { %1761 = vmatpush.bf16.xpose.msrb.mxu2 %v1752_v55  ;;  %v1845_v63 = vsel %vm1478_vm7, %v1840_v62, 0 }
 0x370   : > { %1854 = vmatpush.bf16.xpose.msra.mxu1 %v1845_v63 }
 0x372   : > { %v1494_v1 = vpop.f32.mrf.mxu3 }
 0x373   : > { %v1519_v2 = vsel %vm5260_vm9, %v1494_v1, -1e+30 }
 0x374   : > { %v1522_v5 = vsel %vm1521_vm10, %v1519_v2, -inf }
 0x375   : > { %v1838_v6 = vpop.permute.xlu0 %1837  ;;  %1523 = vmax.xlane.f32.xlu1 %v1522_v5 }
 0x376   : > { %v1861_v13 = vpop.permute.xlu2 %1860 }
 0x377   : > { %1877 = vmatpush.bf16.xpose.msra.mxu2 %v1868_v61  ;;  %3439 = vmatmul.msk.bf16.vlgmr.msra.gmra.mxu1 %vm1478_vm7, %v1838_v6 }
 0x37a   : > { %v1496_v7 = vpop.f32.mrf.mxu3 }
 0x37e   : > { %3436 = vmatmul.msk.bf16.vlgmr.msrb.gmra.mxu2 %vm1478_vm7, %v1745_v59 }
 0x382   : > { %v1513_v8 = vpop.f32.mrf.mxu3 }
 0x383   : > { %v1520_v9 = vsel %vm5260_vm9, %v1513_v8, -1e+30 }
 0x384   : > { %v1525_v10 = vsel %vm1521_vm10, %v1520_v9, -inf }
 0x385   : > { %1526 = vmax.xlane.f32.xlu0 %v1525_v10 }
 0x38a   : > { %v1515_v12 = vpop.f32.mrf.mxu3 }
 0x38e   : > { %3440 = vmatmul.msk.bf16.vlgmr.msra.gmra.mxu2 %vm1478_vm7, %v1861_v13 }
 0x3d2   : > { %v1612_v14 = vpop.f32.mrf.mxu2 }
 0x3d3   : > { %v1645_v15 = vsel %vm5260_vm9, %v1612_v14, -1e+30 }
 0x3d4   : > { %v1647_v16 = vsel %vm1521_vm10, %v1645_v15, -inf }
 0x3d5   : > { %1648 = vmax.xlane.f32.xlu2 %v1647_v16 }
 0x3da   : > { %v1614_v17 = vpop.f32.mrf.mxu2 }
 0x3e4   : > { %v1740_v18 = vpop.f32.mrf.mxu1 }
 0x3e5   : > { %v1767_v19 = vsel %vm5260_vm9, %v1740_v18, -1e+30 }
 0x3e6   : > { %v1769_v20 = vsel %vm1521_vm10, %v1767_v19, -inf }
 0x3e7   : > { %1770 = vmax.xlane.f32.xlu0 %v1769_v20 }
 0x3e8   : > { %v1524_v22 = vpop.xlane.xlu1 %1523 }
 0x3e9   : > { %v1528_v23 = vsub.f32 %v1519_v2, %v1524_v22 }
 0x3eb   : > { %v1530_v25 = vmul.f32 1.442695, %v1528_v23 }
 0x3ec   : > { %v1742_v26 = vpop.f32.mrf.mxu1 }
 0x3ed   : > { %4035 = vpow2.f32 %v1530_v25  ;;  %1793 = vrot.lane.b32.xlu2 %v5280_v24, %s4637_s21 }
 0x3f1   : > { %v1641_v27 = vpop.f32.mrf.mxu2 }
 0x3f2   : > { %v1646_v28 = vsel %vm5260_vm9, %v1641_v27, -1e+30 }
 0x3f3   : > { %v4036_v29 = vpop.eup %4035  ;;  %v1650_v31 = vsel %vm1521_vm10, %v1646_v28, -inf }
 0x3f4   : > { %v1856_v32 = vpop.f32.mrf.mxu1  ;;  %1651 = vmax.xlane.f32.xlu1 %v1650_v31  ;;  %v1534_v30 = vsel %vm1521_vm10, %v4036_v29, 0.0 }
 0x3f5   : > { %1535 = vadd.xlane.f32.xlu0 %v1534_v30  ;;  %v1883_v33 = vsel %vm5260_vm9, %v1856_v32, -1e+30 }
 0x3f6   : > { %v1885_v38 = vsel %vm1521_vm10, %v1883_v33, -inf }
 0x3f8   : > { %v1527_v34 = vpop.xlane.xlu0 %1526 }
 0x3f9   : > { %v1529_v35 = vsub.f32 %v1520_v9, %v1527_v34  ;;  %v1643_v36 = vpop.f32.mrf.mxu2 }
 0x3fb   : > { %v1532_v37 = vmul.f32 1.442695, %v1529_v35 }
 0x3fc   : > { %v1858_v39 = vpop.f32.mrf.mxu1  ;;  %1886 = vmax.xlane.f32.xlu1 %v1885_v38 }
 0x3fd   : > { %4037 = vpow2.f32 %v1532_v37 }
 0x401   : > { %v1763_v40 = vpop.f32.mrf.mxu2 }
 0x402   : > { %v1768_v48 = vsel %vm5260_vm9, %v1763_v40, -1e+30 }
 0x403   : > { %v4038_v41 = vpop.eup %4037  ;;  %v1772_v49 = vsel %vm1521_vm10, %v1768_v48, -inf }
 0x404   : > { %v1537_v44 = vsel %vm1521_vm10, %v4038_v41, 0.0 }
 0x405   : > { %1538 = vadd.xlane.f32.xlu1 %v1537_v44 }
 0x409   : > { %v1765_v46 = vpop.f32.mrf.mxu2  ;;  %1698 = vrot.lane.b32.xlu0 %v5293_v45, %s4636_s23 }
 0x411   : > { %v1879_v47 = vpop.f32.mrf.mxu2 }
 0x412   : > { %v1884_v43 = vsel %vm5260_vm9, %v1879_v47, -1e+30 }
 0x413   : > { %v1888_v51 = vsel %vm1521_vm10, %v1884_v43, -inf }
 0x416   : > { %1773 = vmax.xlane.f32.xlu2 %v1772_v49 }
 0x419   : > { %v1881_v50 = vpop.f32.mrf.mxu2 }
 0x41e   : > { %1889 = vmax.xlane.f32.xlu2 %v1888_v51  ;;  %1674 = vrot.lane.b32.xlu1 %v5280_v24, %s4636_s23 }
 0x448   : > { %v1649_v52 = vpop.xlane.xlu2 %1648 }
 0x449   : > { %v1653_v53 = vsub.f32 %v1645_v15, %v1649_v52 }
 0x44b   : > { %v1655_v54 = vmul.f32 1.442695, %v1653_v53 }
 0x44d   : > { %4039 = vpow2.f32 %v1655_v54 }
 0x450   : > { %v1794_v20 = vpop.permute.xlu2 %1793 }
 0x453   : > { %v5305_v55 = vpop.eup %4039 }
 0x454   : > { %v1659_v56 = vsel %vm1521_vm10, %v5305_v55, 0.0 }
 0x455   : > { %1660 = vadd.xlane.f32.xlu0 %v1659_v56 }
 0x45a   : > { %v1771_v57 = vpop.xlane.xlu0 %1770 }
 0x45b   : > { %v1775_v58 = vsub.f32 %v1767_v19, %v1771_v57 }
 0x45d   : > { %v1777_v59 = vmul.f32 1.442695, %v1775_v58 }
 0x45f   : > { %4041 = vpow2.f32 %v1777_v59 }
 0x465   : > { %v5309_v60 = vpop.eup %4041 }
 0x466   : > { %v1781_v61 = vsel %vm1521_vm10, %v5309_v60, 0.0 }
 0x467   : > { %1782 = vadd.xlane.f32.xlu2 %v1781_v61  ;;  %v1652_v62 = vpop.xlane.xlu1 %1651 }
 0x468   : > { %v1654_v63 = vsub.f32 %v1646_v28, %v1652_v62  ;;  %v1536_v0 = vpop.xlane.xlu0 %1535 }
 0x469   : > { %1814 = vrot.lane.b32.xlu0 %v5293_v45, %s4637_s21  ;;  %4043 = vrcp.f32 %v1536_v0 }
 0x46a   : > { %v1657_v1 = vmul.f32 1.442695, %v1654_v63 }
 0x46c   : > { %4045 = vpow2.f32 %v1657_v1 }
 0x46f   : > { %v4044_v2 = vpop.eup %4043  ;;  %v1887_v5 = vpop.xlane.xlu1 %1886 }
 0x470   : > { %v1542_v6 = vmul.f32 %v4044_v2, %v4036_v29  ;;  %v1891_v7 = vsub.f32 %v1883_v33, %v1887_v5  ;;  %v1799_v29 = vsel %vm1549_vm8, %v1794_v20, 0 }
 0x472   : > { %v4046_v8 = vpop.eup %4045  ;;  %v1544_v9 = vpack.c.bf16 %v1542_v6, %v1542_v6  ;;  %v1893_v10 = vmul.f32 1.442695, %v1891_v7 }
 0x473   : > { %v1662_v12 = vsel %vm1521_vm10, %v4046_v8, 0.0 }
 0x474   : > { %4047 = vpow2.f32 %v1893_v10  ;;  %1663 = vadd.xlane.f32.xlu2 %v1662_v12  ;;  %3429 = vmatmul.msk.bf16.vlgmr.msra.gmra.mxu3 %vm1521_vm10, %v1544_v9 }
 0x478   : > { %v1539_v13 = vpop.xlane.xlu1 %1538 }
 0x479   : > { %4049 = vrcp.f32 %v1539_v13 }
 0x47a   : > { %v5317_v14 = vpop.eup %4047 }
 0x47b   : > { %v1699_v15 = vpop.permute.xlu0 %1698  ;;  %v1897_v16 = vsel %vm1521_vm10, %v5317_v14, 0.0 }
 0x47c   : > { %v1704_v17 = vsel %vm1549_vm8, %v1699_v15, 0  ;;  %1898 = vadd.xlane.f32.xlu1 %v1897_v16 }
 0x47d   : > { %1713 = vmatpush.bf16.msra.mxu0 %v1704_v17 }
 0x47f   : > { %v4050_v18 = vpop.eup %4049 }
 0x480   : > { %v1543_v19 = vmul.f32 %v4050_v18, %v4038_v41 }
 0x482   : > { %v1545_v21 = vpack.c.bf16 %v1543_v19, %v1543_v19 }
 0x484   : > { %3430 = vmatmul.msk.bf16.vlgmr.msrb.gmra.mxu0 %vm1521_vm10, %v1545_v21 }
 0x489   : > { %v1774_v22 = vpop.xlane.xlu2 %1773 }
 0x48a   : > { %v1776_v23 = vsub.f32 %v1768_v48, %v1774_v22 }
 0x48c   : > { %v1779_v25 = vmul.f32 1.442695, %v1776_v23 }
 0x48e   : > { %4051 = vpow2.f32 %v1779_v25 }
 0x490   : > { %v1675_v26 = vpop.permute.xlu1 %1674 }
 0x491   : > { %v1890_v27 = vpop.xlane.xlu2 %1889  ;;  %v1680_v28 = vsel %vm1549_vm8, %v1675_v26, 0 }
 0x492   : > { %v1892_v31 = vsub.f32 %v1884_v43, %v1890_v27  ;;  %1689 = vmatpush.bf16.msrb.mxu3 %v1680_v28 }
 0x494   : > { %v4052_v32 = vpop.eup %4051  ;;  %v1895_v30 = vmul.f32 1.442695, %v1892_v31 }
 0x495   : > { %v1784_v33 = vsel %vm1521_vm10, %v4052_v32, 0.0 }
 0x496   : > { %1808 = vmatpush.bf16.msra.mxu3 %v1799_v29  ;;  %4053 = vpow2.f32 %v1895_v30  ;;  %1785 = vadd.xlane.f32.xlu2 %v1784_v33 }
 0x49c   : > { %v4054_v34 = vpop.eup %4053 }
 0x49d   : > { %v1900_v35 = vsel %vm1521_vm10, %v4054_v34, 0.0 }
 0x49e   : > { %1901 = vadd.xlane.f32.xlu0 %v1900_v35 }
 0x4ae   : > { %1909 = vrot.lane.b32.xlu2 %v5280_v24, %s4638_s15 }
 0x4b6   : > { %1930 = vrot.lane.b32.xlu2 %v5293_v45, %s4638_s15 }
 0x4c8   : > { %v1661_v36 = vpop.xlane.xlu0 %1660 }
 0x4c9   : > { %4055 = vrcp.f32 %v1661_v36 }
 0x4cf   : > { %v4056_v37 = vpop.eup %4055 }
 0x4d0   : > { %v1667_v38 = vmul.f32 %v4056_v37, %v5305_v55 }
 0x4d2   : > { %v1669_v39 = vpack.c.bf16 %v1667_v38, %v1667_v38 }
 0x4d4   : > { %3433 = vmatmul.msk.bf16.vlgmr.msrb.gmra.mxu3 %vm1521_vm10, %v1669_v39  ;;  %v3809_v39 = vld [vmem:[%s5103_s1 + $0x38] sm:$0xff] }
 0x4d5   : > { %2073 = vmatpush.bf16.msrb.mxu1 %v3809_v39 }
 0x4da   : > { %v1783_v40 = vpop.xlane.xlu2 %1782 }
 0x4db   : > { %4057 = vrcp.f32 %v1783_v40  ;;  %v1815_v41 = vpop.permute.xlu0 %1814  ;;  %v3808_v40 = vld [vmem:[%s5103_s1 + $0x30] sm:$0xff] }
 0x4dc   : > { %v1820_v42 = vsel %vm1549_vm8, %v1815_v41, 0  ;;  %2074 = vmatpush.bf16.msrb.mxu1 %v3808_v40  ;;  %v3807_v41 = vld [vmem:[%s5103_s1 + $0x28] sm:$0xff] }
 0x4dd   : > { %1829 = vmatpush.bf16.msrb.mxu0 %v1820_v42  ;;  %v3806_v42 = vld [vmem:[%s5103_s1 + $0x20] sm:$0xff] }
 0x4de   : > { %v3557_v40 = vld [vmem:[%s5119_s24 + $0xa0] sm:$0xf] }
 0x4e0   : > { %2075 = vmatpush.bf16.msrb.mxu1 %v3807_v41  ;;  %v3832_v41 = vld [vmem:[%s5119_s24 + $0xac] sm:$0xf0] }
 0x4e1   : > { %v4058_v44 = vpop.eup %4057 }
 0x4e2   : > { %v1789_v24 = vmul.f32 %v4058_v44, %v5309_v60  ;;  %v3805_v44 = vld [vmem:[%s5103_s1 + $0x18] sm:$0xff] }
 0x4e4   : > { %v1791_v46 = vpack.c.bf16 %v1789_v24, %v1789_v24  ;;  %2076 = vmatpush.bf16.msrb.mxu1 %v3806_v42  ;;  %v3804_v24 = vld [vmem:[%s5103_s1 + $0x10] sm:$0xff]  ;;  %v3830_v42 = vld [vmem:[%s5119_s24 + $0xa4] sm:$0xf] }
 0x4e6   : > { %3437 = vmatmul.msk.bf16.vlgmr.msra.gmra.mxu3 %vm1521_vm10, %v1791_v46  ;;  %v3803_v46 = vld [vmem:[%s5103_s1 + $0x8] sm:$0xff] }
 0x4e7   : > { %v1664_v45 = vpop.xlane.xlu2 %1663 }
 0x4e8   : > { %4059 = vrcp.f32 %v1664_v45  ;;  %2077 = vmatpush.bf16.msrb.mxu1 %v3805_v44  ;;  %v3802_v45 = vld [vmem:[%s5103_s1] sm:$0xff]  ;;  %s5702_s1 = scalar_lea.vmem [#allocation16], %s5077_s28  ;;  %v3558_v44 = vor.u32 %v3832_v41, %v3557_v40 }
 0x4e9   : > { %v3477_v40 = vld [vmem:[%s5119_s24] sm:$0xf] }
 0x4ec   : > { %2078 = vmatpush.bf16.msrb.mxu1 %v3804_v24  ;;  %v3559_v24 = vld [vmem:[%s5119_s24 + $0xb0] sm:$0xf0] }
 0x4ee   : > { %v4060_v47 = vpop.eup %4059 }
 0x4ef   : > { %v1668_v48 = vmul.f32 %v4060_v47, %v4046_v8  ;;  %v1899_v52 = vpop.xlane.xlu1 %1898 }
 0x4f0   : > { %4061 = vrcp.f32 %v1899_v52  ;;  %2079 = vmatpush.bf16.msrb.mxu1 %v3803_v46  ;;  %v3565_v46 = vld [vmem:[%s5119_s24 + $0xa8] sm:$0xf] }
 0x4f1   : > { %v1670_v49 = vpack.c.bf16 %v1668_v48, %v1668_v48 }
 0x4f3   : > { %3434 = vmatmul.msk.bf16.vlgmr.msra.gmra.mxu0 %vm1521_vm10, %v1670_v49 }
 0x4f4   : > { %2080 = vmatpush.bf16.msrb.mxu1 %v3802_v45  ;;  %v3833_v45 = vld [vmem:[%s5119_s24 + $0xb4] sm:$0xf0] }
 0x4f6   : > { %v4062_v55 = vpop.eup %4061 }
 0x4f7   : > { %v5337_v50 = vpop.f32.mrf.mxu3  ;;  %v1905_v57 = vmul.f32 %v4062_v55, %v5317_v14 }
 0x4f9   : > { %v1907_v63 = vpack.c.bf16 %v1905_v57, %v1905_v57 }
 0x4ff   : > { %v1564_v43 = vpop.f32.mrf.mxu3 }
 0x500   : > { %v1585_v43 = vpack.c.bf16 %v5337_v50, %v5337_v50 }
 0x501   : > { %v5339_v51 = vpop.f32.mrf.mxu0 }
 0x509   : > { %v1786_v53 = vpop.xlane.xlu2 %1785  ;;  %v1583_v54 = vpop.f32.mrf.mxu0 }
 0x50a   : > { %4063 = vrcp.f32 %v1786_v53  ;;  %v1586_v53 = vpack.c.bf16 %v5339_v51, %v5339_v51 }
 0x510   : > { %v4064_v56 = vpop.eup %4063 }
 0x511   : > { %v1790_v58 = vmul.f32 %v4064_v56, %v4052_v32  ;;  %v1910_v59 = vpop.permute.xlu2 %1909  ;;  %v1902_v62 = vpop.xlane.xlu0 %1901 }
 0x512   : > { %v1915_v60 = vsel %vm1549_vm8, %v1910_v59, 0  ;;  %4065 = vrcp.f32 %v1902_v62 }
 0x513   : > { %v1792_v61 = vpack.c.bf16 %v1790_v58, %v1790_v58  ;;  %1924 = vmatpush.bf16.msrb.mxu3 %v1915_v60 }
 0x515   : > { %3438 = vmatmul.msk.bf16.vlgmr.msrb.gmra.mxu0 %vm1521_vm10, %v1792_v61 }
 0x516   : > { %3441 = vmatmul.msk.bf16.vlgmr.msrb.gmra.mxu3 %vm1521_vm10, %v1907_v63 }
 0x518   : > { %v4066_v2 = vpop.eup %4065 }
 0x519   : > { %v1931_v0 = vpop.permute.xlu2 %1930  ;;  %v1906_v5 = vmul.f32 %v4066_v2, %v4054_v34 }
 0x51a   : > { %v1936_v1 = vsel %vm1549_vm8, %v1931_v0, 0  ;;  %v4025_v0 = vld [vmem:[%s5702_s1] ss:$0 sm:$0xff] }
 0x51b   : > { %1945 = vmatpush.bf16.msra.mxu0 %v1936_v1  ;;  %v1908_v6 = vpack.c.bf16 %v1906_v5, %v1906_v5 }
 0x525   : > { %3442 = vmatmul.msk.bf16.vlgmr.msra.gmra.mxu0 %vm1521_vm10, %v1908_v6 }
 0x557   : > { %v1691_v7 = vpop.f32.mrf.mxu3 }
 0x558   : > { %v1719_v8 = vpack.c.bf16 %v1691_v7, %v1691_v7 }
 0x55a   : > { %v1955_v9 = vunpack.c.l.b16 %v1719_v8 }
 0x55c   : > { %v1957_v10 = vpack.c.b16 %v1955_v9, %v1955_v9 }
 0x55e   : > { %1959 = vrot.lane.b32.xlu2 %v1957_v10, %s4638_s15 }
 0x55f   : > { %v1693_v12 = vpop.f32.mrf.mxu3 }
 0x569   : > { %v1810_v13 = vpop.f32.mrf.mxu3 }
 0x56a   : > { %v1835_v14 = vpack.c.bf16 %v1810_v13, %v1810_v13 }
 0x56c   : > { %v1965_v15 = vunpack.c.l.b16 %v1835_v14 }
 0x56e   : > { %v1967_v16 = vpack.c.b16 %v1965_v15, %v1965_v15  ;;  %v3589_v15 = vld [vmem:[%s5119_s24 + $0xe0] sm:$0xf] }
 0x570   : > { %1969 = vrot.lane.b32.xlu2 %v1967_v16, %s4637_s21  ;;  %v1715_v17 = vpop.f32.mrf.mxu0  ;;  %v3840_v16 = vld [vmem:[%s5119_s24 + $0xec] sm:$0xf0] }
 0x571   : > { %v1720_v18 = vpack.c.bf16 %v1715_v17, %v1715_v17  ;;  %v1812_v19 = vpop.f32.mrf.mxu3  ;;  %v3838_v17 = vld [vmem:[%s5119_s24 + $0xe4] sm:$0xf] }
 0x572   : > { %v3591_v19 = vld [vmem:[%s5119_s24 + $0xf0] sm:$0xf0] }
 0x573   : > { %v1956_v20 = vunpack.c.l.b16 %v1720_v18  ;;  %v3590_v18 = vor.u32 %v3840_v16, %v3589_v15  ;;  %v3509_v16 = vld [vmem:[%s5119_s24 + $0x40] sm:$0xf] }
 0x575   : > { %v1958_v21 = vpack.c.b16 %v1956_v20, %v1956_v20  ;;  %v3597_v20 = vld [vmem:[%s5119_s24 + $0xe8] sm:$0xf]  ;;  %2344 = vmatpush.bf16.msrb.mxu2 %v3590_v18  ;;  %v3818_v18 = vld [vmem:[%s5119_s24 + $0x44] sm:$0xf] }
 0x577   : > { %1961 = vrot.lane.b32.xlu1 %v1958_v21, %s4638_s15  ;;  %v3841_v21 = vld [vmem:[%s5119_s24 + $0xf4] sm:$0xf0] }
 0x578   : > { %v1717_v22 = vpop.f32.mrf.mxu0 }
 0x579   : > { %v3594_v22 = vor.u32 %v3838_v17, %v3591_v19  ;;  %v3820_v17 = vld [vmem:[%s5119_s24 + $0x4c] sm:$0xf0] }
 0x57a   : > { %v3510_v19 = vor.u32 %v3820_v17, %v3509_v16  ;;  %v4027_v17 = vld [vmem:[%s5704_s3] ss:$0 sm:$0xff] }
 0x57b   : > { %2358 = vmatpush.bf16.msra.mxu3 %v3594_v22  ;;  %v3821_v22 = vld [vmem:[%s5119_s24 + $0x54] sm:$0xf0] }
 0x592   : > { %v1831_v23 = vpop.f32.mrf.mxu0 }
 0x593   : > { %v1836_v25 = vpack.c.bf16 %v1831_v23, %v1831_v23  ;;  %v3598_v23 = vor.u32 %v3841_v21, %v3597_v20  ;;  %v3511_v20 = vld [vmem:[%s5119_s24 + $0x50] sm:$0xf0]  ;;  %v3517_v21 = vld [vmem:[%s5119_s24 + $0x48] sm:$0xf] }
 0x595   : > { %v1966_v26 = vunpack.c.l.b16 %v1836_v25  ;;  %v3839_v25 = vld [vmem:[%s5119_s24 + $0xec] sm:$0xf]  ;;  %2372 = vmatpush.bf16.msrb.mxu0 %v3598_v23  ;;  %v3514_v23 = vor.u32 %v3818_v18, %v3511_v20 }
 0x597   : > { %v1968_v27 = vpack.c.b16 %v1966_v26, %v1966_v26  ;;  %v3599_v26 = vld [vmem:[%s5119_s24 + $0xf8] sm:$0xf0] }
 0x599   : > { %1971 = vrot.lane.b32.xlu0 %v1968_v27, %s4637_s21  ;;  %v1926_v28 = vpop.f32.mrf.mxu3  ;;  %v3602_v27 = vor.u32 %v3839_v25, %v3599_v26  ;;  %v3518_v25 = vor.u32 %v3821_v22, %v3517_v21  ;;  %v3819_v26 = vld [vmem:[%s5119_s24 + $0x4c] sm:$0xf]  ;;  %v3865_v21 = vld [vmem:[%s5122_s16 + $0xb8] sm:$0xff] }
 0x59a   : > { %v1951_v29 = vpack.c.bf16 %v1926_v28, %v1926_v28  ;;  %v1833_v31 = vpop.f32.mrf.mxu0  ;;  %v3573_v28 = vld [vmem:[%s5119_s24 + $0xc0] sm:$0xf]  ;;  %v3873_v22 = vld [vmem:[%s5122_s16 + $0xf8] sm:$0xff] }
 0x59b   : > { %v3834_v31 = vld [vmem:[%s5119_s24 + $0xc4] sm:$0xf]  ;;  %2386 = vmatpush.bf16.msra.mxu1 %v3602_v27  ;;  %v3519_v27 = vld [vmem:[%s5119_s24 + $0x58] sm:$0xf0] }
 0x59c   : > { %v1975_v32 = vunpack.c.l.b16 %v1951_v29  ;;  %v3836_v29 = vld [vmem:[%s5119_s24 + $0xcc] sm:$0xf0] }
 0x59e   : > { %v1977_v30 = vpack.c.b16 %v1975_v32, %v1975_v32  ;;  %v3574_v32 = vor.u32 %v3836_v29, %v3573_v28  ;;  %v3522_v28 = vor.u32 %v3819_v26, %v3519_v27  ;;  %v3493_v29 = vld [vmem:[%s5119_s24 + $0x20] sm:$0xf]  ;;  %v3857_v26 = vld [vmem:[%s5122_s16 + $0x78] sm:$0xff]  ;;  %v3863_v27 = vld [vmem:[%s5122_s16 + $0xa8] sm:$0xff] }
 0x5a0   : > { %1979 = vrot.lane.b32.xlu2 %v1977_v30, %s4636_s23  ;;  %v3575_v30 = vld [vmem:[%s5119_s24 + $0xd0] sm:$0xf0]  ;;  %2345 = vmatpush.bf16.msrb.mxu2 %v3574_v32  ;;  %v3814_v32 = vld [vmem:[%s5119_s24 + $0x24] sm:$0xf] }
 0x5a1   : > { %v1928_v33 = vpop.f32.mrf.mxu3 }
 0x5a2   : > { %v1947_v34 = vpop.f32.mrf.mxu0  ;;  %v3581_v33 = vld [vmem:[%s5119_s24 + $0xc8] sm:$0xf] }
 0x5a3   : > { %v1952_v35 = vpack.c.bf16 %v1947_v34, %v1947_v34  ;;  %v3837_v34 = vld [vmem:[%s5119_s24 + $0xd4] sm:$0xf0] }
 0x5a4   : > { %2346 = vmatpush.bf16.msrb.mxu2 %v3558_v44  ;;  %v3812_v44 = vld [vmem:[%s5119_s24 + $0xc] sm:$0xf0] }
 0x5a5   : > { %v1976_v36 = vunpack.c.l.b16 %v1952_v35  ;;  %v3578_v35 = vor.u32 %v3834_v31, %v3575_v30  ;;  %v3816_v31 = vld [vmem:[%s5119_s24 + $0x2c] sm:$0xf0] }
 0x5a6   : > { %v3494_v30 = vor.u32 %v3816_v31, %v3493_v29  ;;  %v3848_v29 = vld [vmem:[%s5122_s16 + $0x30] sm:$0xff] }
 0x5a7   : > { %v1978_v37 = vpack.c.b16 %v1976_v36, %v1976_v36  ;;  %v3582_v36 = vor.u32 %v3837_v34, %v3581_v33  ;;  %2359 = vmatpush.bf16.msra.mxu3 %v3578_v35  ;;  %v3495_v33 = vld [vmem:[%s5119_s24 + $0x30] sm:$0xf0]  ;;  %v3501_v34 = vld [vmem:[%s5119_s24 + $0x28] sm:$0xf]  ;;  %v3817_v35 = vld [vmem:[%s5119_s24 + $0x34] sm:$0xf0] }
 0x5a8   : > { %v3856_v31 = vld [vmem:[%s5122_s16 + $0x70] sm:$0xff] }
 0x5a9   : > { %1981 = vrot.lane.b32.xlu2 %v1978_v37, %s4636_s23  ;;  %v3835_v37 = vld [vmem:[%s5119_s24 + $0xcc] sm:$0xf]  ;;  %2373 = vmatpush.bf16.msrb.mxu0 %v3582_v36  ;;  %v3498_v36 = vor.u32 %v3814_v32, %v3495_v33  ;;  %v3862_v32 = vld [vmem:[%s5122_s16 + $0xa0] sm:$0xff] }
 0x5aa   : > { %v1949_v38 = vpop.f32.mrf.mxu0  ;;  %v3847_v33 = vld [vmem:[%s5122_s16 + $0x28] sm:$0xff] }
 0x5ab   : > { %v3583_v38 = vld [vmem:[%s5119_s24 + $0xd8] sm:$0xf0] }
 0x5ac   : > { %v3586_v39 = vor.u32 %v3835_v37, %v3583_v38  ;;  %v3502_v37 = vor.u32 %v3817_v35, %v3501_v34  ;;  %v3815_v38 = vld [vmem:[%s5119_s24 + $0x2c] sm:$0xf]  ;;  %v3861_v35 = vld [vmem:[%s5122_s16 + $0x98] sm:$0xff] }
 0x5ad   : > { %v3855_v34 = vld [vmem:[%s5122_s16 + $0x68] sm:$0xff] }
 0x5ae   : > { %2387 = vmatpush.bf16.msra.mxu1 %v3586_v39  ;;  %v3503_v39 = vld [vmem:[%s5119_s24 + $0x38] sm:$0xf0] }
 0x5b8   : > { %v1960_v47 = vpop.permute.xlu2 %1959 }
 0x5b9   : > { %v1985_v54 = vsel %vm1478_vm7, %v1585_v43, %v1960_v47  ;;  %v3562_v47 = vor.u32 %v3830_v42, %v3559_v24  ;;  %v3567_v43 = vld [vmem:[%s5119_s24 + $0xb8] sm:$0xf0]  ;;  %v3506_v42 = vor.u32 %v3815_v38, %v3503_v39  ;;  %v3810_v24 = vld [vmem:[%s5119_s24 + $0x4] sm:$0xf]  ;;  %v3860_v39 = vld [vmem:[%s5122_s16 + $0x90] sm:$0xff] }
 0x5ba   : > { %v3854_v38 = vld [vmem:[%s5122_s16 + $0x60] sm:$0xff] }
 0x5bb   : > { %2360 = vmatpush.bf16.msra.mxu3 %v3562_v47  ;;  %v3478_v47 = vor.u32 %v3812_v44, %v3477_v40  ;;  %v3868_v40 = vld [vmem:[%s5122_s16 + $0xd0] sm:$0xff]  ;;  %v3853_v44 = vld [vmem:[%s5122_s16 + $0x58] sm:$0xff] }
 0x5ca   : > { %v1970_v48 = vpop.permute.xlu2 %1969 }
 0x5cb   : > { %v1991_v55 = vsel %vm1989_vm11, %v1985_v54, %v1970_v48  ;;  %v3566_v48 = vor.u32 %v3833_v45, %v3565_v46  ;;  %v3828_v54 = vld [vmem:[%s5119_s24 + $0x8c] sm:$0xf0]  ;;  %v3479_v46 = vld [vmem:[%s5119_s24 + $0x10] sm:$0xf0] }
 0x5cd   : > { %2374 = vmatpush.bf16.msrb.mxu0 %v3566_v48  ;;  %v3482_v48 = vor.u32 %v3810_v24, %v3479_v46  ;;  %v3859_v24 = vld [vmem:[%s5122_s16 + $0x88] sm:$0xff] }
 0x5ce   : > { %v3867_v46 = vld [vmem:[%s5122_s16 + $0xc8] sm:$0xff] }
 0x5e9   : > { %v1962_v52 = vpop.permute.xlu1 %1961 }
 0x5ea   : > { %v1988_v56 = vsel %vm1478_vm7, %v1586_v53, %v1962_v52  ;;  %v3541_v53 = vld [vmem:[%s5119_s24 + $0x80] sm:$0xf] }
 0x5fa   : > { %v1980_v49 = vpop.permute.xlu2 %1979 }
 0x5fb   : > { %v1996_v57 = vsel %vm1994_vm12, %v1991_v55, %v1980_v49  ;;  %v3831_v49 = vld [vmem:[%s5119_s24 + $0xac] sm:$0xf]  ;;  %v3826_v55 = vld [vmem:[%s5119_s24 + $0x84] sm:$0xf] }
 0x5fc   : > { %v2021_v62 = vunpack.c.l.b16 %v1996_v57  ;;  %v3570_v52 = vor.u32 %v3831_v49, %v3567_v43  ;;  %v3543_v57 = vld [vmem:[%s5119_s24 + $0x90] sm:$0xf0]  ;;  %v3485_v49 = vld [vmem:[%s5119_s24 + $0x8] sm:$0xf]  ;;  %v3813_v43 = vld [vmem:[%s5119_s24 + $0x14] sm:$0xf0] }
 0x5fe   : > { %2388 = vmatpush.bf16.msra.mxu1 %v3570_v52  ;;  %v3811_v52 = vld [vmem:[%s5119_s24 + $0xc] sm:$0xf] }
 0x603   : > { %v1982_v59 = vpop.permute.xlu2 %1981 }
 0x60b   : > { %v1972_v58 = vpop.permute.xlu0 %1971 }
 0x60c   : > { %v1993_v60 = vsel %vm1989_vm11, %v1988_v56, %v1972_v58  ;;  %v3542_v56 = vor.u32 %v3828_v54, %v3541_v53  ;;  %v3549_v58 = vld [vmem:[%s5119_s24 + $0x88] sm:$0xf]  ;;  %v3486_v53 = vor.u32 %v3813_v43, %v3485_v49  ;;  %v3487_v54 = vld [vmem:[%s5119_s24 + $0x18] sm:$0xf0]  ;;  %v3852_v49 = vld [vmem:[%s5122_s16 + $0x50] sm:$0xff] }
 0x60d   : > { %v1998_v61 = vsel %vm1994_vm12, %v1993_v60, %v1982_v59  ;;  %v3829_v59 = vld [vmem:[%s5119_s24 + $0x94] sm:$0xf0]  ;;  %v3546_v60 = vor.u32 %v3826_v55, %v3543_v57 }
 0x60e   : > { %v2022_v63 = vunpack.c.l.b16 %v1998_v61  ;;  %v3550_v61 = vor.u32 %v3829_v59, %v3549_v58  ;;  %2347 = vmatpush.bf16.msrb.mxu2 %v3542_v56  ;;  %v3490_v56 = vor.u32 %v3811_v52, %v3487_v54  ;;  %v3866_v54 = vld [vmem:[%s5122_s16 + $0xc0] sm:$0xff] }
 0x60f   : > { %2361 = vmatpush.bf16.msra.mxu3 %v3546_v60 }
 0x610   : > { %v2023_v50 = vpack.c.b16 %v2022_v63, %v2021_v62  ;;  %v3827_v62 = vld [vmem:[%s5119_s24 + $0x8c] sm:$0xf]  ;;  %v3551_v63 = vld [vmem:[%s5119_s24 + $0x98] sm:$0xf0]  ;;  %2375 = vmatpush.bf16.msrb.mxu0 %v3550_v61 }
 0x612   : > { %2081 = vmatmul.bf16.vlgmr.msrb.gmra.mxu1 %v2023_v50  ;;  %v3554_v50 = vor.u32 %v3827_v62, %v3551_v63 }
 0x614   : > { %2389 = vmatpush.bf16.msra.mxu1 %v3554_v50 }
 0x68f   : > { %v2082_v1 = vpop.f32.mrf.mxu1 }
 0x690   : > { %v2083_v2 = vadd.f32 %v4025_v0, %v2082_v1  ;;  %v3824_v1 = vld [vmem:[%s5119_s24 + $0x6c] sm:$0xf0] }
 0x692   : > { %v5370_v51 = vadd.f32 %v2083_v2, %v5160_v3  ;;  %v3822_v2 = vld [vmem:[%s5119_s24 + $0x64] sm:$0xf] }
 0x694   : > { %2091 = vadd.xlane.f32.xlu1 %v5370_v51 }
 0x697   : > { %v2084_v5 = vpop.f32.mrf.mxu1 }
 0x698   : > { %v2085_v6 = vadd.f32 %v4025_v0, %v2084_v5  ;;  %v3525_v0 = vld [vmem:[%s5119_s24 + $0x60] sm:$0xf] }
 0x699   : > { %v3526_v5 = vor.u32 %v3824_v1, %v3525_v0 }
 0x69a   : > { %v5374_v7 = vadd.f32 %v2085_v6, %v5163_v4  ;;  %v3527_v6 = vld [vmem:[%s5119_s24 + $0x70] sm:$0xf0] }
 0x69b   : > { %2348 = vmatpush.bf16.msrb.mxu2 %v3526_v5 }
 0x69c   : > { %2093 = vadd.xlane.f32.xlu0 %v5374_v7 }
 0x69f   : > { %2349 = vmatpush.bf16.msrb.mxu2 %v3510_v19 }
 0x6a3   : > { %2350 = vmatpush.bf16.msrb.mxu2 %v3494_v30  ;;  %v3870_v30 = vld [vmem:[%s5122_s16 + $0xe0] sm:$0xff] }
 0x6a7   : > { %2351 = vmatpush.bf16.msrb.mxu2 %v3478_v47 }
 0x707   : > { %v2092_v8 = vpop.xlane.xlu1 %2091 }
 0x708   : > { %v2095_v9 = vmul.f32 %v2092_v8, %v5166_v11  ;;  %v3533_v8 = vld [vmem:[%s5119_s24 + $0x68] sm:$0xf] }
 0x70a   : > { %v5379_v3 = vsub.f32 %v5370_v51, %v2095_v9  ;;  %v3825_v9 = vld [vmem:[%s5119_s24 + $0x74] sm:$0xf0] }
 0x70c   : > { %v2099_v10 = vmul.f32 %v5379_v3, %v5379_v3 }
 0x70e   : > { %2101 = vadd.xlane.f32.xlu2 %v2099_v10  ;;  %v3530_v10 = vor.u32 %v3822_v2, %v3527_v6 }
 0x70f   : > { %v2094_v12 = vpop.xlane.xlu0 %2093 }
 0x710   : > { %v2096_v4 = vmul.f32 %v2094_v12, %v5166_v11  ;;  %v3534_v12 = vor.u32 %v3825_v9, %v3533_v8  ;;  %2362 = vmatpush.bf16.msra.mxu3 %v3530_v10 }
 0x712   : > { %v5385_v13 = vsub.f32 %v5374_v7, %v2096_v4  ;;  %v3823_v4 = vld [vmem:[%s5119_s24 + $0x6c] sm:$0xf]  ;;  %2376 = vmatpush.bf16.msrb.mxu0 %v3534_v12 }
 0x714   : > { %v2100_v14 = vmul.f32 %v5385_v13, %v5385_v13  ;;  %2363 = vmatpush.bf16.msra.mxu3 %v3514_v23  ;;  %v3872_v23 = vld [vmem:[%s5122_s16 + $0xf0] sm:$0xff] }
 0x716   : > { %2103 = vadd.xlane.f32.xlu1 %v2100_v14  ;;  %v3535_v14 = vld [vmem:[%s5119_s24 + $0x78] sm:$0xf0]  ;;  %2377 = vmatpush.bf16.msrb.mxu0 %v3518_v25  ;;  %s5703_s24 = scalar_lea.vmem [#allocation18], %s5077_s28 }
 0x717   : > { %v3538_v15 = vor.u32 %v3823_v4, %v3535_v14  ;;  %v4026_v12 = vld [vmem:[%s5703_s24] ss:$0 sm:$0xff]  ;;  %v3849_v25 = vld [vmem:[%s5122_s16 + $0x38] sm:$0xff] }
 0x718   : > { %2364 = vmatpush.bf16.msra.mxu3 %v3498_v36  ;;  %2736 = vmatpush.bf16.msra.mxu2 %v3849_v25  ;;  %v3869_v36 = vld [vmem:[%s5122_s16 + $0xd8] sm:$0xff] }
 0x719   : > { %2390 = vmatpush.bf16.msra.mxu1 %v3538_v15 }
 0x71a   : > { %2378 = vmatpush.bf16.msrb.mxu0 %v3502_v37  ;;  %v3846_v37 = vld [vmem:[%s5122_s16 + $0x20] sm:$0xff] }
 0x71c   : > { %2365 = vmatpush.bf16.msra.mxu3 %v3482_v48  ;;  %2737 = vmatpush.bf16.msra.mxu2 %v3848_v29  ;;  %v3844_v48 = vld [vmem:[%s5122_s16 + $0x10] sm:$0xff] }
 0x71d   : > { %2391 = vmatpush.bf16.msra.mxu1 %v3522_v28  ;;  %v3871_v28 = vld [vmem:[%s5122_s16 + $0xe8] sm:$0xff] }
 0x71e   : > { %2379 = vmatpush.bf16.msrb.mxu0 %v3486_v53  ;;  %v3858_v53 = vld [vmem:[%s5122_s16 + $0x80] sm:$0xff] }
 0x720   : > { %2750 = vmatpush.bf16.msrb.mxu3 %v3857_v26  ;;  %2738 = vmatpush.bf16.msra.mxu2 %v3847_v33 }
 0x721   : > { %2392 = vmatpush.bf16.msra.mxu1 %v3506_v42  ;;  %v3845_v42 = vld [vmem:[%s5122_s16 + $0x18] sm:$0xff] }
 0x722   : > { %2764 = vmatpush.bf16.msra.mxu0 %v3865_v21 }
 0x724   : > { %2751 = vmatpush.bf16.msrb.mxu3 %v3856_v31  ;;  %2739 = vmatpush.bf16.msra.mxu2 %v3846_v37 }
 0x725   : > { %2393 = vmatpush.bf16.msra.mxu1 %v3490_v56 }
 0x728   : > { %2752 = vmatpush.bf16.msrb.mxu3 %v3855_v34  ;;  %2740 = vmatpush.bf16.msra.mxu2 %v3845_v42 }
 0x729   : > { %2778 = vmatpush.bf16.msrb.mxu1 %v3873_v22 }
 0x72c   : > { %2753 = vmatpush.bf16.msrb.mxu3 %v3854_v38  ;;  %2741 = vmatpush.bf16.msra.mxu2 %v3844_v48 }
 0x72d   : > { %2779 = vmatpush.bf16.msrb.mxu1 %v3872_v23 }
 0x730   : > { %2754 = vmatpush.bf16.msrb.mxu3 %v3853_v44 }
 0x731   : > { %2780 = vmatpush.bf16.msrb.mxu1 %v3871_v28 }
 0x734   : > { %2755 = vmatpush.bf16.msrb.mxu3 %v3852_v49 }
 0x735   : > { %2781 = vmatpush.bf16.msrb.mxu1 %v3870_v30 }
 0x739   : > { %2782 = vmatpush.bf16.msrb.mxu1 %v3869_v36 }
 0x73d   : > { %2783 = vmatpush.bf16.msrb.mxu1 %v3868_v40 }
 0x741   : > { %2784 = vmatpush.bf16.msrb.mxu1 %v3867_v46 }
 0x745   : > { %2785 = vmatpush.bf16.msrb.mxu1 %v3866_v54 }
 0x781   : > { %v2102_v41 = vpop.xlane.xlu2 %2101 }
 0x782   : > { %v2105_v45 = vmul.f32 %v2102_v41, %v5166_v11  ;;  %v5482_v41 = vld [vmem:[%s5152_s8] sm:$0xf] }
 0x783   : > { %v2179_v47 = vperm.slane %v5482_v41, 3 }
 0x784   : > { %v2107_v55 = vadd.f32 1e-05, %v2105_v45  ;;  %v2178_v45 = vperm.slane %v5482_v41, 2 }
 0x786   : > { %4067 = vrsqrt.f32 %v2107_v55  ;;  %vm2115_vm14 = vweird.f32 %v2107_v55 }
 0x789   : > { %v2104_v57 = vpop.xlane.xlu1 %2103 }
 0x78a   : > { %v2106_v58 = vmul.f32 %v2104_v57, %v5166_v11  ;;  %v2176_v57 = vperm.slane %v5482_v41, 0 }
 0x78c   : > { %v4068_v59 = vpop.eup %4067  ;;  %v2108_v60 = vadd.f32 1e-05, %v2106_v58  ;;  %v2177_v58 = vperm.slane %v5482_v41, 1 }
 0x78d   : > { %v2110_v61 = vmul.f32 %v4068_v59, %v2107_v55  ;;  %vm2116_vm13 = vweird.f32 %v4068_v59 }
 0x78e   : > { %4069 = vrsqrt.f32 %v2108_v60  ;;  %vm2117_vm15 = vmor %vm2115_vm14, %vm2116_vm13  ;;  %vm2125_vm1 = vweird.f32 %v2108_v60 }
 0x78f   : > { %v2111_v62 = vmul.f32 %v4068_v59, %v2110_v61 }
 0x791   : > { %v2112_v63 = vmul.f32 0.5, %v2111_v62 }
 0x793   : > { %v2113_v50 = vsub.f32 1.5, %v2112_v63 }
 0x794   : > { %v4070_v0 = vpop.eup %4069 }
 0x795   : > { %v2114_v1 = vmul.f32 %v4068_v59, %v2113_v50  ;;  %v2120_v2 = vmul.f32 %v4070_v0, %v2108_v60  ;;  %vm2126_vm0 = vweird.f32 %v4070_v0  ;;  %v3851_v60 = vld [vmem:[%s5122_s16 + $0x48] sm:$0xff] }
 0x796   : > { %vm2127_vm2 = vmor %vm2125_vm1, %vm2126_vm0  ;;  %2756 = vmatpush.bf16.msrb.mxu3 %v3851_v60 }
 0x797   : > { %v2121_v5 = vmul.f32 %v4070_v0, %v2120_v2  ;;  %v2118_v6 = vsel %vm2117_vm15, %v4068_v59, %v2114_v1  ;;  %v3843_v59 = vld [vmem:[%s5122_s16 + $0x8] sm:$0xff] }
 0x798   : > { %v2129_v10 = vmul.f32 %v2118_v6, %v5379_v3  ;;  %2742 = vmatpush.bf16.msra.mxu2 %v3843_v59  ;;  %v3842_v6 = vld [vmem:[%s5122_s16] sm:$0xff] }
 0x799   : > { %v2122_v8 = vmul.f32 0.5, %v2121_v5 }
 0x79a   : > { %v2134_v16 = vmul.f32 %v4026_v12, %v2129_v10 }
 0x79b   : > { %v2123_v9 = vsub.f32 1.5, %v2122_v8  ;;  %v3850_v8 = vld [vmem:[%s5122_s16 + $0x40] sm:$0xff] }
 0x79c   : > { %v2139_v19 = vadd.f32 %v4027_v17, %v2134_v16  ;;  %2743 = vmatpush.bf16.msra.mxu2 %v3842_v6  ;;  %2757 = vmatpush.bf16.msrb.mxu3 %v3850_v8 }
 0x79d   : > { %v2124_v4 = vmul.f32 %v4070_v0, %v2123_v9 }
 0x79f   : > { %v2128_v14 = vsel %vm2127_vm2, %v4070_v0, %v2124_v4 }
 0x7a0   : > { %v2130_v15 = vmul.f32 %v2128_v14, %v5385_v13  ;;  %v3864_v13 = vld [vmem:[%s5122_s16 + $0xb0] sm:$0xff] }
 0x7a1   : > { %2765 = vmatpush.bf16.msra.mxu0 %v3864_v13 }
 0x7a2   : > { %v2135_v18 = vmul.f32 %v4026_v12, %v2130_v15 }
 0x7a4   : > { %v2140_v3 = vadd.f32 %v4027_v17, %v2135_v18 }
 0x7a5   : > { %2766 = vmatpush.bf16.msra.mxu0 %v3863_v27 }
 0x7a6   : > { %v2141_v20 = vpack.c.bf16 %v2140_v3, %v2139_v19 }
 0x7a8   : > { %2352 = vmatmul.bf16.vlgmr.msrb.gmra.mxu2 %v2141_v20  ;;  %2366 = vmatmul.bf16.vlgmr.msra.gmra.mxu3 %v2141_v20 }
 0x7a9   : > { %2380 = vmatmul.bf16.vlgmr.msrb.gmra.mxu0 %v2141_v20  ;;  %2394 = vmatmul.bf16.vlgmr.msra.gmra.mxu1 %v2141_v20 }
 0x7aa   : > { %2767 = vmatpush.bf16.msra.mxu0 %v3862_v32 }
 0x7ae   : > { %2768 = vmatpush.bf16.msra.mxu0 %v3861_v35 }
 0x7b2   : > { %2769 = vmatpush.bf16.msra.mxu0 %v3860_v39 }
 0x7b6   : > { %2770 = vmatpush.bf16.msra.mxu0 %v3859_v24 }
 0x7ba   : > { %2771 = vmatpush.bf16.msra.mxu0 %v3858_v53 }
 0x826   : > { %v2381_v43 = vpop.f32.mrf.mxu0  ;;  %v2395_v52 = vpop.f32.mrf.mxu1 }
 0x827   : > { %v5494_v55 = vadd.f32 %v2381_v43, %v2178_v45  ;;  %v5496_v56 = vadd.f32 %v2395_v52, %v2179_v47 }
 0x829   : > { %v2402_v61 = vmul.f32 %v5494_v55, %v5494_v55  ;;  %v2403_v62 = vmul.f32 %v5496_v56, %v5496_v56 }
 0x82b   : > { %v2410_v63 = vmul.f32 %v2402_v61, %v5494_v55  ;;  %v2411_v50 = vmul.f32 %v2403_v62, %v5496_v56  ;;  %v2353_v0 = vpop.f32.mrf.mxu2  ;;  %v2367_v1 = vpop.f32.mrf.mxu3 }
 0x82c   : > { %v5508_v2 = vadd.f32 %v2353_v0, %v2176_v57  ;;  %v5510_v5 = vadd.f32 %v2367_v1, %v2177_v58 }
 0x82d   : > { %v2418_v9 = vmul.f32 0.044715, %v2410_v63  ;;  %v2419_v10 = vmul.f32 0.044715, %v2411_v50 }
 0x82e   : > { %v2400_v12 = vmul.f32 %v5508_v2, %v5508_v2  ;;  %v2401_v4 = vmul.f32 %v5510_v5, %v5510_v5  ;;  %v2383_v14 = vpop.f32.mrf.mxu0  ;;  %v2397_v15 = vpop.f32.mrf.mxu1 }
 0x82f   : > { %v2426_v16 = vadd.f32 %v2418_v9, %v5494_v55  ;;  %v2427_v17 = vadd.f32 %v2419_v10, %v5496_v56  ;;  %v2384_v18 = vadd.f32 %v2383_v14, %v2178_v45  ;;  %v5520_v19 = vadd.f32 %v2397_v15, %v2179_v47 }
 0x830   : > { %v2408_v3 = vmul.f32 %v2400_v12, %v5508_v2  ;;  %v2409_v20 = vmul.f32 %v2401_v4, %v5510_v5 }
 0x831   : > { %v2434_v21 = vmul.f32 0.7978846, %v2426_v16  ;;  %v2406_v22 = vmul.f32 %v2384_v18, %v2384_v18  ;;  %v2407_v13 = vmul.f32 %v5520_v19, %v5520_v19  ;;  %v2435_v23 = vmul.f32 0.7978846, %v2427_v17 }
 0x832   : > { %v2416_v25 = vmul.f32 0.044715, %v2408_v3  ;;  %v2417_v26 = vmul.f32 0.044715, %v2409_v20 }
 0x833   : > { %v2414_v27 = vmul.f32 %v2406_v22, %v2384_v18  ;;  %v2415_v28 = vmul.f32 %v2407_v13, %v5520_v19  ;;  %v2355_v29 = vpop.f32.mrf.mxu2  ;;  %v2369_v31 = vpop.f32.mrf.mxu3  ;;  %4071 = vtanh.f32 %v2434_v21 }
 0x834   : > { %v2424_v32 = vadd.f32 %v2416_v25, %v5508_v2  ;;  %v2425_v30 = vadd.f32 %v2417_v26, %v5510_v5  ;;  %v2356_v33 = vadd.f32 %v2355_v29, %v2176_v57  ;;  %v2370_v36 = vadd.f32 %v2369_v31, %v2177_v58 }
 0x835   : > { %v2422_v34 = vmul.f32 0.044715, %v2414_v27  ;;  %v2423_v35 = vmul.f32 0.044715, %v2415_v28  ;;  %4073 = vtanh.f32 %v2435_v23 }
 0x836   : > { %v2432_v37 = vmul.f32 0.7978846, %v2424_v32  ;;  %v2433_v38 = vmul.f32 0.7978846, %v2425_v30  ;;  %v2404_v39 = vmul.f32 %v2356_v33, %v2356_v33  ;;  %v2405_v42 = vmul.f32 %v2370_v36, %v2370_v36 }
 0x837   : > { %v2430_v40 = vadd.f32 %v2422_v34, %v2384_v18  ;;  %v2431_v41 = vadd.f32 %v2423_v35, %v5520_v19 }
 0x838   : > { %v2412_v44 = vmul.f32 %v2404_v39, %v2356_v33  ;;  %4075 = vtanh.f32 %v2432_v37  ;;  %v2413_v45 = vmul.f32 %v2405_v42, %v2370_v36 }
 0x839   : > { %v2438_v24 = vmul.f32 0.7978846, %v2430_v40  ;;  %v2439_v46 = vmul.f32 0.7978846, %v2431_v41  ;;  %4077 = vtanh.f32 %v2433_v38  ;;  %v4072_v48 = vpop.eup %4071 }
 0x83a   : > { %v2420_v47 = vmul.f32 0.044715, %v2412_v44  ;;  %v2421_v49 = vmul.f32 0.044715, %v2413_v45  ;;  %v2450_v54 = vadd.f32 1.0, %v4072_v48 }
 0x83b   : > { %4079 = vtanh.f32 %v2438_v24  ;;  %v4074_v43 = vpop.eup %4073 }
 0x83c   : > { %4081 = vtanh.f32 %v2439_v46  ;;  %v2428_v52 = vadd.f32 %v2420_v47, %v2356_v33  ;;  %v2429_v53 = vadd.f32 %v2421_v49, %v2370_v36  ;;  %v2451_v59 = vadd.f32 1.0, %v4074_v43 }
 0x83d   : > { %v2458_v50 = vmul.f32 0.5, %v2450_v54 }
 0x83e   : > { %v2436_v57 = vmul.f32 0.7978846, %v2428_v52  ;;  %v4076_v58 = vpop.eup %4075  ;;  %v2437_v60 = vmul.f32 0.7978846, %v2429_v53  ;;  %v2459_v1 = vmul.f32 0.5, %v2451_v59 }
 0x83f   : > { %v4078_v61 = vpop.eup %4077  ;;  %v2448_v6 = vadd.f32 1.0, %v4076_v58  ;;  %v2466_v14 = vmul.f32 %v2458_v50, %v5494_v55 }
 0x840   : > { %4083 = vtanh.f32 %v2436_v57  ;;  %v2449_v9 = vadd.f32 1.0, %v4078_v61  ;;  %v2467_v17 = vmul.f32 %v2459_v1, %v5496_v56 }
 0x841   : > { %v4080_v62 = vpop.eup %4079  ;;  %4085 = vtanh.f32 %v2437_v60  ;;  %v2456_v3 = vmul.f32 0.5, %v2448_v6 }
 0x842   : > { %v4082_v63 = vpop.eup %4081  ;;  %v2454_v0 = vadd.f32 1.0, %v4080_v62  ;;  %v2457_v22 = vmul.f32 0.5, %v2449_v9 }
 0x843   : > { %v2455_v8 = vadd.f32 1.0, %v4082_v63  ;;  %v2464_v28 = vmul.f32 %v2456_v3, %v5508_v2 }
 0x844   : > { %v2462_v10 = vmul.f32 0.5, %v2454_v0  ;;  %v2465_v55 = vmul.f32 %v2457_v22, %v5510_v5 }
 0x845   : > { %v2463_v12 = vmul.f32 0.5, %v2455_v8 }
 0x846   : > { %v4084_v4 = vpop.eup %4083  ;;  %v2470_v15 = vmul.f32 %v2462_v10, %v2384_v18 }
 0x847   : > { %v4086_v16 = vpop.eup %4085  ;;  %v2471_v20 = vmul.f32 %v2463_v12, %v5520_v19  ;;  %v2452_v21 = vadd.f32 1.0, %v4084_v4  ;;  %v4028_v19 = vld [vmem:[%s1148_s12] ss:$0 sm:$0xff]  ;;  %s5706_s12 = sld [smem:[#allocation41_spill]] }
 0x848   : > { %v2453_v13 = vadd.f32 1.0, %v4086_v16  ;;  %v2474_v23 = vpack.c.bf16 %v2470_v15, %v2466_v14 }
 0x849   : > { %v2460_v25 = vmul.f32 0.5, %v2452_v21  ;;  %v2475_v26 = vpack.c.bf16 %v2471_v20, %v2467_v17 }
 0x84a   : > { %v2461_v27 = vmul.f32 0.5, %v2453_v13  ;;  %2772 = vmatmul.bf16.vlgmr.msra.gmra.mxu0 %v2474_v23 }
 0x84b   : > { %v2468_v29 = vmul.f32 %v2460_v25, %v2356_v33  ;;  %2786 = vmatmul.bf16.vlgmr.msrb.gmra.mxu1 %v2475_v26 }
 0x84c   : > { %v2469_v18 = vmul.f32 %v2461_v27, %v2370_v36 }
 0x84d   : > { %v2472_v56 = vpack.c.bf16 %v2468_v29, %v2464_v28  ;;  %p3731_p5 = scmp.ne.s32.totalorder %s5706_s12, 1 }
 0x84e   : > { %v2473_v31 = vpack.c.bf16 %v2469_v18, %v2465_v55  ;;  %s5707_s17 = sld [smem:[#allocation63_spill]] (!%p3731_p5) }
 0x84f   : > { %2744 = vmatmul.bf16.vlgmr.msra.gmra.mxu2 %v2472_v56  ;;  %s5708_s4 = sld [smem:[#allocation64_spill]] (!%p3731_p5) }
 0x850   : > { %2758 = vmatmul.bf16.vlgmr.msrb.gmra.mxu3 %v2473_v31  ;;  %s3732_s9 = sld [smem:[#allocation3 + $0x1]] (!%p3731_p5) }
 0x851   : > { %s2854_s10 = sld [smem:[#allocation3]] (!%p3731_p5) }
 0x856   : > { %s3131_s30 = scalar_lea.vmem (!%p3731_p5), [#allocation25], %s3732_s9 }
 0x857   : > { %s2855_s29 = scalar_lea.vmem (!%p3731_p5), [#allocation25], %s2854_s10 }
 0x8c7   : > { %v2773_v35 = vpop.f32.mrf.mxu0 }
 0x8c8   : > { %v2787_v2 = vpop.f32.mrf.mxu1 }
 0x8cf   : > { %v2775_v42 = vpop.f32.mrf.mxu0 }
 0x8d0   : > { %v2789_v24 = vpop.f32.mrf.mxu1 }
 0x8d2   : > { %v2745_v32 = vpop.f32.mrf.mxu2 }
 0x8d3   : > { %v2746_v30 = vadd.f32 %v4028_v19, %v2745_v32  ;;  %v2759_v34 = vpop.f32.mrf.mxu3 }
 0x8d5   : > { %v2760_v37 = vadd.f32 %v2759_v34, %v2746_v30 }
 0x8d7   : > { %v2774_v33 = vadd.f32 %v2773_v35, %v2760_v37 }
 0x8d9   : > { %v2788_v38 = vadd.f32 %v2787_v2, %v2774_v33 }
 0x8da   : > { %v2747_v39 = vpop.f32.mrf.mxu2 }
 0x8db   : > { %v2792_v5 = vadd.f32 %v2788_v38, %v5370_v51  ;;  %v2748_v36 = vadd.f32 %v4028_v19, %v2747_v39  ;;  %v2761_v40 = vpop.f32.mrf.mxu3 }
 0x8dd   : > { %2794 = vst [vmem:[#allocation25] sm:$0xff] %v2792_v5  ;;  %v2762_v41 = vadd.f32 %v2761_v40, %v2748_v36 }
 0x8df   : > { %v2776_v44 = vadd.f32 %v2775_v42, %v2762_v41 }
 0x8e1   : > { %v2790_v46 = vadd.f32 %v2789_v24, %v2776_v44  ;;  %2799 = sbr.rel (%p3731_p5) target bundleno = 2699 (0xa8b), region = 160 }
 0x8e3   : > { %v2793_v45 = vadd.f32 %v2790_v46, %v5374_v7 }
 0x8e5   : > { %2795 = vst [vmem:[#allocation25 + $0x8] sm:$0xff] %v2793_v45 }
 0x8e6   : > { %2802 = vadd.xlane.f32.xlu0 %v2792_v5  ;;  %v3881_v57 = vld [vmem:[#allocation24 + $0x38] sm:$0xff]  ;;  %v3880_v7 = vld [vmem:[#allocation24 + $0x30] sm:$0xff]  ;;  %v3879_v58 = vld [vmem:[#allocation24 + $0x28] sm:$0xff]  ;;  %vm2864_vm9 = vcmask 1040384  }
 0x8e7   : > { %2931 = vmatpush.bf16.msra.mxu0 %v3881_v57  ;;  %v3878_v59 = vld [vmem:[#allocation24 + $0x20] sm:$0xff]  ;;  %v3877_v62 = vld [vmem:[#allocation24 + $0x18] sm:$0xff]  ;;  %v3876_v50 = vld [vmem:[#allocation24 + $0x10] sm:$0xff] }
 0x8e8   : > { %v3875_v0 = vld [vmem:[#allocation24 + $0x8] sm:$0xff]  ;;  %v3874_v10 = vld [vmem:[#allocation24] sm:$0xff]  ;;  %v4088_v13 = vld [vmem:[%s5708_s4] ss:$0 sm:$0xff] }
 0x8eb   : > { %2932 = vmatpush.bf16.msra.mxu0 %v3880_v7 }
 0x8ee   : > { %2804 = vadd.xlane.f32.xlu0 %v2793_v45 }
 0x8ef   : > { %2933 = vmatpush.bf16.msra.mxu0 %v3879_v58 }
 0x8f3   : > { %2934 = vmatpush.bf16.msra.mxu0 %v3878_v59 }
 0x8f7   : > { %2935 = vmatpush.bf16.msra.mxu0 %v3877_v62 }
 0x8fb   : > { %2936 = vmatpush.bf16.msra.mxu0 %v3876_v50 }
 0x8ff   : > { %2937 = vmatpush.bf16.msra.mxu0 %v3875_v0 }
 0x903   : > { %2938 = vmatpush.bf16.msra.mxu0 %v3874_v10 }
 0x959   : > { %v2803_v47 = vpop.xlane.xlu0 %2802 }
 0x95a   : > { %v2806_v48 = vmul.f32 %v2803_v47, %v5166_v11 }
 0x95c   : > { %v2808_v51 = vsub.f32 %v2792_v5, %v2806_v48 }
 0x95e   : > { %v2810_v49 = vmul.f32 %v2808_v51, %v2808_v51 }
 0x960   : > { %2812 = vadd.xlane.f32.xlu1 %v2810_v49 }
 0x961   : > { %v2805_v43 = vpop.xlane.xlu0 %2804 }
 0x962   : > { %v2807_v52 = vmul.f32 %v2805_v43, %v5166_v11 }
 0x964   : > { %v2809_v53 = vsub.f32 %v2793_v45, %v2807_v52 }
 0x966   : > { %v2811_v54 = vmul.f32 %v2809_v53, %v2809_v53 }
 0x968   : > { %2814 = vadd.xlane.f32.xlu1 %v2811_v54 }
 0x9d3   : > { %v2813_v60 = vpop.xlane.xlu1 %2812 }
 0x9d4   : > { %v2816_v61 = vmul.f32 %v2813_v60, %v5166_v11 }
 0x9d6   : > { %v2818_v63 = vadd.f32 1e-05, %v2816_v61 }
 0x9d8   : > { %4089 = vrsqrt.f32 %v2818_v63  ;;  %vm2826_vm4 = vweird.f32 %v2818_v63 }
 0x9db   : > { %v2815_v1 = vpop.xlane.xlu1 %2814 }
 0x9dc   : > { %v2817_v6 = vmul.f32 %v2815_v1, %v5166_v11  ;;  %v4087_v11 = vld [vmem:[%s5707_s17] ss:$0 sm:$0xff] }
 0x9de   : > { %v4090_v8 = vpop.eup %4089  ;;  %v2819_v9 = vadd.f32 1e-05, %v2817_v6 }
 0x9df   : > { %v2821_v12 = vmul.f32 %v4090_v8, %v2818_v63  ;;  %vm2827_vm3 = vweird.f32 %v4090_v8 }
 0x9e0   : > { %4091 = vrsqrt.f32 %v2819_v9  ;;  %vm2828_vm5 = vmor %vm2826_vm4, %vm2827_vm3  ;;  %vm2836_vm7 = vweird.f32 %v2819_v9 }
 0x9e1   : > { %v2822_v4 = vmul.f32 %v4090_v8, %v2821_v12 }
 0x9e3   : > { %v2823_v14 = vmul.f32 0.5, %v2822_v4 }
 0x9e5   : > { %v2824_v15 = vsub.f32 1.5, %v2823_v14 }
 0x9e6   : > { %v4092_v16 = vpop.eup %4091 }
 0x9e7   : > { %v2825_v17 = vmul.f32 %v4090_v8, %v2824_v15  ;;  %v2831_v3 = vmul.f32 %v4092_v16, %v2819_v9  ;;  %vm2837_vm6 = vweird.f32 %v4092_v16 }
 0x9e8   : > { %vm2838_vm8 = vmor %vm2836_vm7, %vm2837_vm6 }
 0x9e9   : > { %v2829_v20 = vsel %vm2828_vm5, %v4090_v8, %v2825_v17  ;;  %v2832_v21 = vmul.f32 %v4092_v16, %v2831_v3 }
 0x9ea   : > { %v2840_v22 = vmul.f32 %v2829_v20, %v2808_v51 }
 0x9eb   : > { %v2833_v23 = vmul.f32 0.5, %v2832_v21 }
 0x9ec   : > { %v2845_v25 = vmul.f32 %v4087_v11, %v2840_v22 }
 0x9ed   : > { %v2834_v26 = vsub.f32 1.5, %v2833_v23 }
 0x9ee   : > { %v2850_v27 = vadd.f32 %v4088_v13, %v2845_v25 }
 0x9ef   : > { %v2835_v28 = vmul.f32 %v4092_v16, %v2834_v26 }
 0x9f0   : > { %2852 = vst [vmem:[#allocation25] sm:$0xff] %v2850_v27 }
 0x9f1   : > { %v2839_v29 = vsel %vm2838_vm8, %v4092_v16, %v2835_v28 }
 0x9f2   : > { %v2841_v55 = vmul.f32 %v2839_v29, %v2809_v53 }
 0x9f4   : > { %v2846_v18 = vmul.f32 %v4087_v11, %v2841_v55 }
 0x9f6   : > { %v2851_v56 = vadd.f32 %v4088_v13, %v2846_v18 }
 0x9f8   : > { %2853 = vst [vmem:[#allocation25 + $0x8] sm:$0xff] %v2851_v56 }
 0x9ff   : > { %v3733_v31 = vld [vmem:[%s3131_s30 + $0x8] sm:$0x1]  ;;  %v2856_v32 = vld [vmem:[%s2855_s29] sm:$0x1] }
 0xa00   : > { %v2862_v19 = vrot.slane %v3733_v31, 7 }
 0xa02   : > { %v2865_v30 = vsel %vm2864_vm9, %v2856_v32, %v2862_v19 }
 0xa03   : > { %v2866_v34 = vpack.c.bf16 %v2865_v30, %v2865_v30 }
 0xa05   : > { %2939 = vmatmul.bf16.vlgmr.msra.gmra.mxu0 %v2866_v34 }
 0xa82   : > { %v2940_v35 = vpop.f32.mrf.mxu0 }
 0xa83   : > { %2944 = vst [vmem:[#allocation26] sm:$0x3] %v2940_v35 }
 0xa8a   : > { %v2942_v37 = vpop.f32.mrf.mxu0 }
 0xa8b PF: > { %s5709_s2 = sld [smem:[#allocation41_spill]]  ;;  %s4639_s19 = smov [#allocation25]  }
 0xa8c   : > { %s2950_s25 = sshll.u32 %s4639_s19, 4  ;;  %s5710_s0 = sld [smem:[#allocation66_spill]]  ;;  %s2951_s25 = int_to_ptr.vmem [resolvable:$true] %s2950_s25 }
 0xa8d   : > { %s4640_s11 = smov 128   ;;  %s4641_s23 = smov 8  }
 0xa8e   : > { %s5711_s1 = sld [smem:[#allocation67_spill]]  ;;  %s4642_s3 = smov [#allocation26]  }
 0xa8f   : > { %s2965_s8 = sshll.u32 %s4642_s3, 4  ;;  %s2966_s8 = int_to_ptr.vmem [resolvable:$true] %s2965_s8 }
 0xa91   : > { %p3966_p8 = scmp.eq.s32.totalorder %s5709_s2, 1 }
 0xa92   : > { %s2952_s27 = sshll.u32 %s5710_s0, 4  ;;  %s2953_s27 = int_to_ptr.hbm [resolvable:$true] %s2952_s27 }
 0xa93   : > { %3913 = dma.vmem_to_hbm [thread:$0]  (%p3966_p8), %s2951_s25, 256, %s2953_s27, [#allocation6], %s4640_s11, %s4640_s11, %s4641_s23  }
 0xa94   : > { %s2967_s24 = sshll.u32 %s5711_s1, 4  ;;  %s2968_s24 = int_to_ptr.hbm [resolvable:$true] %s2967_s24 }
 0xa95   : > { %3915 = dma.vmem_to_hbm [thread:$0]  (%p3966_p8), %s2966_s8, 32, %s2968_s24, [#allocation27]  }
 0xa96   : > { %4602 = dma.done.wait (%p3966_p8), [#allocation6], 256  }
 0xa97   : > { %4604 = vsyncadd (%p3966_p8), [#allocation6], 4294967040 }
 0xa98   : > { %4606 = dma.done.wait (%p3966_p8), [#allocation27], 32  }
 0xa99   : > { %4608 = vsyncadd (%p3966_p8), [#allocation27], 4294967264 }
 0xa9a PF: > { %s5712_s23 = sld [smem:[#allocation42_spill]] }
 0xa9b   : > { %s5713_s4 = sld [smem:[#allocation39_spill]] }
 0xa9c   : > { %s5714_s15 = sld [smem:[#allocation40_spill]] }
 0xa9d   : > { %s5715_s0 = sld [smem:[#allocation43_spill]] }
 0xaa0   : > { %p59_p9 = scmp.ge.s32.totalorder %s5712_s23, 4  }
 0xaa2   :  { %61 = sbr.rel (!%p59_p9) target bundleno = 50 (0x32), region = 299 }
 0xaa7   :  { %2986 = vsyncpa [#allocation5], 1 }
 0xaa8   :  { %2988 = vsyncpa [#allocation5 + $0x1], 1 }
 0xaa9   :  { %2989 = vsyncpa [#allocation8], 1 }
 0xaaa   :  { %2991 = vsyncpa [#allocation8 + $0x1], 1 }
 0xaab   :  { %2992 = vsyncpa [#allocation11], 1 }
 0xaac   :  { %2994 = vsyncpa [#allocation11 + $0x1], 1 }
 0xaad   :  { %2995 = vsyncpa [#allocation14], 1 }
 0xaae   :  { %2997 = vsyncpa [#allocation14 + $0x1], 1 }
 0xaaf   :  { %2998 = vsyncpa [#allocation17], 1 }
 0xab0   :  { %3000 = vsyncpa [#allocation17 + $0x1], 1 }
 0xab1   :  { %3001 = vsyncpa [#allocation20], 1 }
 0xab2   :  { %3003 = vsyncpa [#allocation20 + $0x1], 1 }
 0xab3   :  { %3004 = vsyncpa [#allocation23], 1 }
 0xab4   :  { %3006 = vsyncpa [#allocation23 + $0x1], 1 }
 0xab5   :  { %3007 = vsyncpa [#allocation6], 1 }
 0xab6   :  { %3009 = vsyncpa [#allocation6 + $0x1], 1 }
 0xab7   :  { %3010 = vsyncpa [#allocation27], 1 }

</bundles_post_ra>
